<compile_context>
chip_gen: v5e
topology: v5e:2x2
jax: 0.10.0
libtpu: 0.0.40
codegen_flags: <defaults>
</compile_context>

<pallas_src>
import functools
import math

import jax
import jax.numpy as jnp
import numpy as np
from jax import lax
from jax.experimental import pallas as pl
from jax.experimental.pallas import tpu as pltpu


def _round_up(x, m):
    return ((x + m - 1) // m) * m


def _vmem_limit_bytes():
    """~75% of physical VMEM, capped at 100 MiB (v5e/v6e -> 96 MiB, v7x -> 48 MiB)."""
    try:
        cap = pltpu.get_tpu_info().vmem_capacity_bytes
    except Exception:
        cap = 128 * 1024 * 1024
    return int(min(cap * 3 // 4, 100 * 1024 * 1024))


def _pick_a_tile(A, C_in_p, C_out_p, KS, NN, P, P2p):
    """Largest anchor tile (<= 8, to bound unrolling) whose working set fits ~24 MiB."""
    budget = 24 * 1024 * 1024
    fixed = P * NN * P2p * 2 + NN * P2p * 4                    # one-hot (bf16) + idx row
    best = 1
    for at in range(1, min(A, 8) + 1):
        per = ((at * C_in_p * P * 2) * 2                       # feats tile (bf16, 2 buffers)
               + (at * KS * NN * P2p * 4) * 2                  # inter_w tile (f32, 2 buffers)
               + (at * C_in_p * NN * P2p * 4)                  # gathered GT (f32)
               + (KS * C_in_p * at * P2p * 4)                  # fused "new" operand (f32)
               + (C_out_p * at * P2p * 4) * 2)                 # conv output tile (2 buffers)
        if fixed + per <= budget:
            best = at
    return best


def _inter_conv_kernel(idx_ref, feats_ref, w_ref, w2_ref,
                       conv_ref, ssum_ref, ssq_ref):
    """SO(3) point conv for one (batch, anchor-tile) grid step.

    idx_ref  : (1, NN*P2p)          int32  flattened neighbor ids, col = n*P2p + p2
    feats_ref: (A_T*C_in_p, P)      bf16   source features, rows = (a_local, c)
    w_ref    : (A_T, KS, NN, P2p)   f32    kernel-correlation weights, P2 lane-minor
    w2_ref   : (C_out_p, KS*C_in_p) f32    fused BasicSO3Conv weight, col = k*C_in_p + c
    conv_ref : (C_out_p, A_T*P2p)   f32    pre-norm conv output, col = a_local*P2p + p2
    ssum_ref : (C_out_p, 1)         f32    per-tile channel sum       (InstanceNorm partials)
    ssq_ref  : (C_out_p, 1)         f32    per-tile channel sum-of-sq (InstanceNorm partials)
    """
    ACp, P = feats_ref.shape
    A_T, KS, NN, P2p = w_ref.shape
    C_in_p = ACp // A_T
    NNP2 = NN * P2p

    # One-hot gather operand, built once per grid step (bf16 is exact for 0/1).
    idx_row = idx_ref[...]                                     # (1, NNP2)
    q = lax.broadcasted_iota(jnp.int32, (P, NNP2), 0)
    onehot = (idx_row == q).astype(jnp.bfloat16)               # (P, NNP2)

    # Single MXU gather matmul, shared across all anchors in the tile and all kernel points:
    #   gt[(a,c), n*P2p + p2] = feats[c, inter_idx[p2, n], a]
    gt = jnp.dot(feats_ref[...], onehot,
                 preferred_element_type=jnp.float32)           # (A_T*C_in_p, NNP2)

    # NN-reduction against inter_w: small VPU multiply-adds on (C_in_p, P2p) tiles
    # (all slices are static and (8, 128)-aligned), assembling new[(k, c), (a, p2)].
    new_cols = []
    for a in range(A_T):
        gt_a = gt[a * C_in_p:(a + 1) * C_in_p, :]              # 8-aligned sublane slice
        w_ak = [w_ref[a, k] for k in range(KS)]                # each (NN, P2p)
        acc = [jnp.zeros((C_in_p, P2p), jnp.float32) for _ in range(KS)]
        for n in range(NN):
            g_an = gt_a[:, n * P2p:(n + 1) * P2p]              # 128-aligned lane slice
            for k in range(KS):
                acc[k] = acc[k] + g_an * w_ak[k][n:n + 1, :]
        new_cols.append(jnp.concatenate(acc, axis=0))          # (KS*C_in_p, P2p)
    new = jnp.concatenate(new_cols, axis=1)                    # (KS*C_in_p, A_T*P2p)

    # Fused BasicSO3Conv: ONE lane-dense MXU matmul, N = A_T*P2p.
    conv = jnp.dot(w2_ref[...], new,
                   preferred_element_type=jnp.float32,
                   precision=lax.Precision.HIGHEST)            # (C_out_p, A_T*P2p)
    conv_ref[...] = conv

    # Partial InstanceNorm statistics (padded (a, p2) columns are exactly zero -> no bias).
    ssum_ref[...] = jnp.sum(conv, axis=1, keepdims=True)
    ssq_ref[...] = jnp.sum(conv * conv, axis=1, keepdims=True)


def _norm_relu_kernel(ssum_ref, ssq_ref, conv_ref, out_ref, *, count, eps):
    """InstanceNorm2d(affine=False) + ReLU for one (batch, anchor-tile) grid step.

    ssum_ref / ssq_ref : (nA, C_out_p, 1)  per-anchor-tile partial stats for this batch
    conv_ref / out_ref : (C_out_p, A_T*P2p)
    """
    total = jnp.sum(ssum_ref[...], axis=0)                     # (C_out_p, 1)
    total_sq = jnp.sum(ssq_ref[...], axis=0)                   # (C_out_p, 1)
    mean = total / count
    var = total_sq / count - mean * mean                       # biased, as nn.InstanceNorm2d
    inv = lax.rsqrt(var + eps)
    out_ref[...] = jnp.maximum((conv_ref[...] - mean) * inv, 0.0)


def inter_so3_conv_block(xyz, feats, inter_idx, inter_w, W, anchors, *, a_tile=None):
    """Forward of InterSO3ConvBlock with precomputed (inter_idx, inter_w), stride=1.

    xyz       : (B, 3, P)
    feats     : (B, C_in, P, A)
    inter_idx : (B, P2, NN) int32
    inter_w   : (B, P2, A, KS, NN)
    W         : (C_out, C_in*KS)   BasicSO3Conv weight (column index = c*KS + k)
    anchors   : (A, 3, 3)

    Returns (inter_idx, inter_w, sample_idx, (xyz, feat, anchors)).
    """
    B, C_in, P, A = feats.shape
    _, P2, NN = inter_idx.shape
    C_out = W.shape[0]
    KS = inter_w.shape[3]
    assert W.shape[1] == C_in * KS

    # ---- padded / lane-dense layouts (glue: layout transforms only) ----------------------
    C_in_p = _round_up(C_in, 8)
    C_out_p = _round_up(C_out, 8)
    P2p = _round_up(P2, 128)
    if a_tile is None:
        a_tile = _pick_a_tile(A, C_in_p, C_out_p, KS, NN, P, P2p)
    A_T = max(1, min(a_tile, A))
    nA = -(-A // A_T)
    A_pad = nA * A_T

    # feats -> (B, A_pad*C_in_p, P), rows = (anchor, channel); bf16 MXU operand.
    feats_t = jnp.transpose(feats, (0, 3, 1, 2))
    feats_t = jnp.pad(feats_t, ((0, 0), (0, A_pad - A), (0, C_in_p - C_in), (0, 0)))
    feats_g = feats_t.reshape(B, A_pad * C_in_p, P).astype(jnp.bfloat16)

    # inter_idx -> (B, 1, NN*P2p) with col = n*P2p + p2 (P2 lane-minor, padded with index 0).
    idx_t = jnp.pad(jnp.transpose(inter_idx, (0, 2, 1)).astype(jnp.int32),
                    ((0, 0), (0, 0), (0, P2p - P2)))
    idx_g = idx_t.reshape(B, 1, NN * P2p)

    # inter_w -> (B, A_pad, KS, NN, P2p) with P2 lane-minor; padded (a, p2) weights are zero,
    # so padded positions contribute exactly 0 to the conv and to the norm statistics.
    w_t = jnp.transpose(inter_w, (0, 2, 3, 4, 1)).astype(jnp.float32)
    w_g = jnp.pad(w_t, ((0, 0), (0, A_pad - A), (0, 0), (0, 0), (0, P2p - P2)))

    # W -> fused (C_out_p, KS*C_in_p), column = k*C_in_p + c (matches the in-kernel "new" rows).
    W3 = jnp.transpose(W.reshape(C_out, C_in, KS), (0, 2, 1)).astype(jnp.float32)
    W3 = jnp.pad(W3, ((0, C_out_p - C_out), (0, 0), (0, C_in_p - C_in)))
    W2 = W3.reshape(C_out_p, KS * C_in_p)

    vmem_limit = _vmem_limit_bytes()
    grid = (B, nA)

    # ---- kernel 1: gather matmul + NN-reduce + fused conv matmul + norm partials ---------
    flops1 = B * nA * (2 * (A_T * C_in_p) * P * (NN * P2p)
                       + 2 * A_T * KS * C_in_p * NN * P2p
                       + 2 * C_out_p * (KS * C_in_p) * (A_T * P2p))
    bytes1 = (idx_g.size * 4 + feats_g.size * 2 + w_g.size * 4 + B * nA * W2.size * 4
              + B * C_out_p * A_pad * P2p * 4 + 2 * B * nA * C_out_p * 4)

    conv_flat, ssum, ssq = pl.pallas_call(
        _inter_conv_kernel,
        out_shape=(
            jax.ShapeDtypeStruct((B, C_out_p, A_pad * P2p), jnp.float32),
            jax.ShapeDtypeStruct((B, nA, C_out_p, 1), jnp.float32),
            jax.ShapeDtypeStruct((B, nA, C_out_p, 1), jnp.float32),
        ),
        grid=grid,
        in_specs=[
            pl.BlockSpec((None, 1, NN * P2p), lambda b, at: (b, 0, 0)),
            pl.BlockSpec((None, A_T * C_in_p, P), lambda b, at: (b, at, 0)),
            pl.BlockSpec((None, A_T, KS, NN, P2p), lambda b, at: (b, at, 0, 0, 0)),
            pl.BlockSpec((C_out_p, KS * C_in_p), lambda b, at: (0, 0)),
        ],
        out_specs=[
            pl.BlockSpec((None, C_out_p, A_T * P2p), lambda b, at: (b, 0, at)),
            pl.BlockSpec((None, None, C_out_p, 1), lambda b, at: (b, at, 0, 0)),
            pl.BlockSpec((None, None, C_out_p, 1), lambda b, at: (b, at, 0, 0)),
        ],
        compiler_params=pltpu.CompilerParams(
            dimension_semantics=("parallel", "parallel"),
            vmem_limit_bytes=vmem_limit),
        cost_estimate=pl.CostEstimate(flops=flops1, transcendentals=0,
                                      bytes_accessed=bytes1),
    )(idx_g, feats_g, w_g, W2)

    # ---- kernel 2: InstanceNorm2d(affine=False, eps=1e-5) + ReLU, in place ---------------
    count = float(A * P2)          # true (unpadded) spatial extent per (batch, channel)
    flops2 = 4 * B * C_out_p * A_pad * P2p
    bytes2 = 2 * B * C_out_p * A_pad * P2p * 4 + 4 * B * nA * C_out_p * 4

    out_flat = pl.pallas_call(
        functools.partial(_norm_relu_kernel, count=count, eps=1e-5),
        out_shape=jax.ShapeDtypeStruct((B, C_out_p, A_pad * P2p), jnp.float32),
        grid=grid,
        in_specs=[
            pl.BlockSpec((None, nA, C_out_p, 1), lambda b, at: (b, 0, 0, 0)),
            pl.BlockSpec((None, nA, C_out_p, 1), lambda b, at: (b, 0, 0, 0)),
            pl.BlockSpec((None, C_out_p, A_T * P2p), lambda b, at: (b, 0, at)),
        ],
        out_specs=pl.BlockSpec((None, C_out_p, A_T * P2p), lambda b, at: (b, 0, at)),
        input_output_aliases={2: 0},   # normalize the conv buffer in place
        compiler_params=pltpu.CompilerParams(
            dimension_semantics=("parallel", "parallel"),
            vmem_limit_bytes=vmem_limit),
        cost_estimate=pl.CostEstimate(flops=flops2,
                                      transcendentals=B * nA * C_out_p,
                                      bytes_accessed=bytes2),
    )(ssum, ssq, conv_flat)

    # ---- glue: strip padding and restore the module's (B, C_out, P2, A) layout -----------
    feat = out_flat.reshape(B, C_out_p, A_pad, P2p)[:, :C_out, :A, :P2]
    feat = jnp.transpose(feat, (0, 1, 3, 2))       # (B, C_out, P2, A)

    sample_idx = None                              # stride == 1 / indices supplied
    return inter_idx, inter_w, sample_idx, (xyz, feat, anchors)


def _reference_numpy(feats, inter_idx, inter_w, W):
    """Pure numpy (float64) reference of the same forward pass."""
    f = np.asarray(feats, np.float64)
    idx = np.asarray(inter_idx)
    w = np.asarray(inter_w, np.float64)
    Wn = np.asarray(W, np.float64)
    B, C_in, P, A = f.shape
    _, P2, NN = idx.shape
    C_out = Wn.shape[0]
    KS = w.shape[3]

    gathered = np.stack([f[b][:, idx[b], :] for b in range(B)], axis=0)     # (B, C, P2, NN, A)
    new = np.einsum('bcpna,bpakn->bckpa', gathered, w)                       # (B, C, KS, P2, A)
    x = new.reshape(B, C_in * KS, P2 * A)
    y = np.einsum('oi,bis->bos', Wn, x).reshape(B, C_out, P2, A)
    mean = y.mean(axis=(2, 3), keepdims=True)
    var = ((y - mean) ** 2).mean(axis=(2, 3), keepdims=True)                 # biased
    feat = np.maximum((y - mean) / np.sqrt(var + 1e-5), 0.0)
    return feat


if __name__ == "__main__":
    # Small shapes consistent with the module (dim_in=4, dim_out=8, kernel_size=3,
    # n_neighbor=8, kanchor=4, 16 points, batch 2, stride 1).
    B, C_in, C_out, P, A, KS, NN = 2, 4, 8, 16, 4, 3, 8

    key = jax.random.PRNGKey(0)
    k1, k2, k3, k4, k5 = jax.random.split(key, 5)

    xyz = jax.random.normal(k1, (B, 3, P), jnp.float32)
    feats = jax.random.normal(k2, (B, C_in, P, A), jnp.float32)
    inter_idx = jax.random.randint(k3, (B, P, NN), 0, P, dtype=jnp.int32)
    inter_w = jax.random.uniform(k4, (B, P, A, KS, NN), jnp.float32)

    # BasicSO3Conv weight: (dim_out, dim_in*kernel_size), xavier_normal_ gain=0.001.
    std = 0.001 * math.sqrt(2.0 / (C_in * KS + C_out))
    W = (std * jax.random.normal(k5, (C_out, C_in * KS), jnp.float32)).astype(jnp.float32)

    anchors = jnp.tile(jnp.eye(3, dtype=jnp.float32)[None], (A, 1, 1))

    out_idx, out_w, sample_idx, (out_xyz, out_feat, out_anchors) = inter_so3_conv_block(
        xyz, feats, inter_idx, inter_w, W, anchors)
    jax.block_until_ready(out_feat)

    # The gather matmul feeds bf16 operands to the MXU (the one-hot is exact in bf16, so the
    # only rounding is bf16(feats)); all downstream math accumulates in f32 and the conv matmul
    # uses Precision.HIGHEST.  Check tightly against a reference run on bf16-rounded feats, and
    # loosely against the full-precision reference.
    feats_bf = np.asarray(jnp.asarray(feats).astype(jnp.bfloat16).astype(jnp.float32))
    ref_bf = _reference_numpy(feats_bf, inter_idx, inter_w, W)
    np.testing.assert_allclose(np.asarray(out_feat), ref_bf, rtol=5e-3, atol=2e-3)

    ref_exact = _reference_numpy(feats, inter_idx, inter_w, W)
    np.testing.assert_allclose(np.asarray(out_feat), ref_exact, rtol=2e-2, atol=2e-2)

    assert out_feat.shape == (B, C_out, P, A)
    print("KERNEL_OK")
</pallas_src>

<mosaic_0001>
module attributes {stable_mosaic.version = 11 : i64} {
  func.func @_inter_conv_kernel(%arg0: i32, %arg1: i32, %arg2: memref<1x1x1024xi32, #tpu.memory_space<vmem>>, %arg3: memref<1x32x16xbf16, #tpu.memory_space<vmem>>, %arg4: memref<1x4x3x8x128xf32, #tpu.memory_space<vmem>>, %arg5: memref<8x24xf32, #tpu.memory_space<vmem>>, %arg6: memref<1x8x512xf32, #tpu.memory_space<vmem>>, %arg7: memref<1x1x8x1xf32, #tpu.memory_space<vmem>>, %arg8: memref<1x1x8x1xf32, #tpu.memory_space<vmem>>) attributes {dimension_semantics = [#tpu.dimension_semantics<parallel>, #tpu.dimension_semantics<parallel>], iteration_bounds = array<i64: 2, 1>, scalar_prefetch = 0 : i64, scratch_operands = 0 : i64, tpu.core_type = #tpu.core_type<tc>, window_params = [{transform_indices = @transform_0, window_bounds = array<i64: 1, 1, 1024>}, {transform_indices = @transform_1, window_bounds = array<i64: 1, 32, 16>}, {transform_indices = @transform_2, window_bounds = array<i64: 1, 4, 3, 8, 128>}, {pipeline_mode = #tpu.pipeline_mode<synchronous>, transform_indices = @transform_3, window_bounds = array<i64: 8, 24>}, {transform_indices = @transform_4, window_bounds = array<i64: 1, 8, 512>}, {transform_indices = @transform_5, window_bounds = array<i64: 1, 1, 8, 1>}, {transform_indices = @transform_6, window_bounds = array<i64: 1, 1, 8, 1>}]} {
    %c0 = arith.constant 0 : index
    %c0_0 = arith.constant 0 : index
    %c0_1 = arith.constant 0 : index
    %0 = vector.load %arg2[%c0, %c0_0, %c0_1] : memref<1x1x1024xi32, #tpu.memory_space<vmem>>, vector<1x1x1024xi32>
    %1 = vector.shape_cast %0 : vector<1x1x1024xi32> to vector<1x1024xi32>
    %2 = tpu.iota {dimensions = array<i32: 0>} : vector<16x1024xi32>
    %3 = vector.broadcast %1 : vector<1x1024xi32> to vector<16x1024xi32>
    %4 = arith.cmpi eq, %3, %2 : vector<16x1024xi32>
    %5 = arith.extui %4 : vector<16x1024xi1> to vector<16x1024xi32>
    %6 = arith.sitofp %5 : vector<16x1024xi32> to vector<16x1024xf32>
    %7 = arith.truncf %6 : vector<16x1024xf32> to vector<16x1024xbf16>
    %c0_2 = arith.constant 0 : index
    %c0_3 = arith.constant 0 : index
    %c0_4 = arith.constant 0 : index
    %8 = vector.load %arg3[%c0_2, %c0_3, %c0_4] : memref<1x32x16xbf16, #tpu.memory_space<vmem>>, vector<1x32x16xbf16>
    %9 = vector.shape_cast %8 : vector<1x32x16xbf16> to vector<32x16xbf16>
    %cst = arith.constant dense<0.000000e+00> : vector<32x1024xf32>
    %10 = tpu.matmul %9, %7, %cst {dimension_numbers = #tpu.dot_dimension_numbers<[1], [0], [0], [1], [0, 0, 1, 1], [], []>} : vector<32x16xbf16>, vector<16x1024xbf16>, vector<32x1024xf32> -> vector<32x1024xf32>
    %11 = vector.extract_strided_slice %10 {offsets = [0, 0], sizes = [8, 1024], strides = [1, 1]} : vector<32x1024xf32> to vector<8x1024xf32>
    %c0_5 = arith.constant 0 : index
    %c0_6 = arith.constant 0 : index
    %c0_7 = arith.constant 0 : index
    %c0_8 = arith.constant 0 : index
    %c0_9 = arith.constant 0 : index
    %12 = vector.load %arg4[%c0_5, %c0_6, %c0_7, %c0_8, %c0_9] : memref<1x4x3x8x128xf32, #tpu.memory_space<vmem>>, vector<1x1x1x8x128xf32>
    %13 = vector.shape_cast %12 : vector<1x1x1x8x128xf32> to vector<8x128xf32>
    %c0_10 = arith.constant 0 : index
    %c0_11 = arith.constant 0 : index
    %c1 = arith.constant 1 : index
    %c0_12 = arith.constant 0 : index
    %c0_13 = arith.constant 0 : index
    %14 = vector.load %arg4[%c0_10, %c0_11, %c1, %c0_12, %c0_13] : memref<1x4x3x8x128xf32, #tpu.memory_space<vmem>>, vector<1x1x1x8x128xf32>
    %15 = vector.shape_cast %14 : vector<1x1x1x8x128xf32> to vector<8x128xf32>
    %c0_14 = arith.constant 0 : index
    %c0_15 = arith.constant 0 : index
    %c2 = arith.constant 2 : index
    %c0_16 = arith.constant 0 : index
    %c0_17 = arith.constant 0 : index
    %16 = vector.load %arg4[%c0_14, %c0_15, %c2, %c0_16, %c0_17] : memref<1x4x3x8x128xf32, #tpu.memory_space<vmem>>, vector<1x1x1x8x128xf32>
    %17 = vector.shape_cast %16 : vector<1x1x1x8x128xf32> to vector<8x128xf32>
    %cst_18 = arith.constant 0.000000e+00 : f32
    %18 = vector.broadcast %cst_18 : f32 to vector<8x128xf32>
    %cst_19 = arith.constant 0.000000e+00 : f32
    %19 = vector.broadcast %cst_19 : f32 to vector<8x128xf32>
    %cst_20 = arith.constant 0.000000e+00 : f32
    %20 = vector.broadcast %cst_20 : f32 to vector<8x128xf32>
    %21 = vector.extract_strided_slice %11 {offsets = [0, 0], sizes = [8, 128], strides = [1, 1]} : vector<8x1024xf32> to vector<8x128xf32>
    %22 = vector.extract_strided_slice %13 {offsets = [0, 0], sizes = [1, 128], strides = [1, 1]} : vector<8x128xf32> to vector<1x128xf32>
    %23 = vector.broadcast %22 : vector<1x128xf32> to vector<8x128xf32>
    %24 = arith.mulf %21, %23 : vector<8x128xf32>
    %25 = arith.addf %18, %24 : vector<8x128xf32>
    %26 = vector.extract_strided_slice %15 {offsets = [0, 0], sizes = [1, 128], strides = [1, 1]} : vector<8x128xf32> to vector<1x128xf32>
    %27 = vector.broadcast %26 : vector<1x128xf32> to vector<8x128xf32>
    %28 = arith.mulf %21, %27 : vector<8x128xf32>
    %29 = arith.addf %19, %28 : vector<8x128xf32>
    %30 = vector.extract_strided_slice %17 {offsets = [0, 0], sizes = [1, 128], strides = [1, 1]} : vector<8x128xf32> to vector<1x128xf32>
    %31 = vector.broadcast %30 : vector<1x128xf32> to vector<8x128xf32>
    %32 = arith.mulf %21, %31 : vector<8x128xf32>
    %33 = arith.addf %20, %32 : vector<8x128xf32>
    %34 = vector.extract_strided_slice %11 {offsets = [0, 128], sizes = [8, 128], strides = [1, 1]} : vector<8x1024xf32> to vector<8x128xf32>
    %35 = vector.extract_strided_slice %13 {offsets = [1, 0], sizes = [1, 128], strides = [1, 1]} : vector<8x128xf32> to vector<1x128xf32>
    %36 = vector.broadcast %35 : vector<1x128xf32> to vector<8x128xf32>
    %37 = arith.mulf %34, %36 : vector<8x128xf32>
    %38 = arith.addf %25, %37 : vector<8x128xf32>
    %39 = vector.extract_strided_slice %15 {offsets = [1, 0], sizes = [1, 128], strides = [1, 1]} : vector<8x128xf32> to vector<1x128xf32>
    %40 = vector.broadcast %39 : vector<1x128xf32> to vector<8x128xf32>
    %41 = arith.mulf %34, %40 : vector<8x128xf32>
    %42 = arith.addf %29, %41 : vector<8x128xf32>
    %43 = vector.extract_strided_slice %17 {offsets = [1, 0], sizes = [1, 128], strides = [1, 1]} : vector<8x128xf32> to vector<1x128xf32>
    %44 = vector.broadcast %43 : vector<1x128xf32> to vector<8x128xf32>
    %45 = arith.mulf %34, %44 : vector<8x128xf32>
    %46 = arith.addf %33, %45 : vector<8x128xf32>
    %47 = vector.extract_strided_slice %11 {offsets = [0, 256], sizes = [8, 128], strides = [1, 1]} : vector<8x1024xf32> to vector<8x128xf32>
    %48 = vector.extract_strided_slice %13 {offsets = [2, 0], sizes = [1, 128], strides = [1, 1]} : vector<8x128xf32> to vector<1x128xf32>
    %49 = vector.broadcast %48 : vector<1x128xf32> to vector<8x128xf32>
    %50 = arith.mulf %47, %49 : vector<8x128xf32>
    %51 = arith.addf %38, %50 : vector<8x128xf32>
    %52 = vector.extract_strided_slice %15 {offsets = [2, 0], sizes = [1, 128], strides = [1, 1]} : vector<8x128xf32> to vector<1x128xf32>
    %53 = vector.broadcast %52 : vector<1x128xf32> to vector<8x128xf32>
    %54 = arith.mulf %47, %53 : vector<8x128xf32>
    %55 = arith.addf %42, %54 : vector<8x128xf32>
    %56 = vector.extract_strided_slice %17 {offsets = [2, 0], sizes = [1, 128], strides = [1, 1]} : vector<8x128xf32> to vector<1x128xf32>
    %57 = vector.broadcast %56 : vector<1x128xf32> to vector<8x128xf32>
    %58 = arith.mulf %47, %57 : vector<8x128xf32>
    %59 = arith.addf %46, %58 : vector<8x128xf32>
    %60 = vector.extract_strided_slice %11 {offsets = [0, 384], sizes = [8, 128], strides = [1, 1]} : vector<8x1024xf32> to vector<8x128xf32>
    %61 = vector.extract_strided_slice %13 {offsets = [3, 0], sizes = [1, 128], strides = [1, 1]} : vector<8x128xf32> to vector<1x128xf32>
    %62 = vector.broadcast %61 : vector<1x128xf32> to vector<8x128xf32>
    %63 = arith.mulf %60, %62 : vector<8x128xf32>
    %64 = arith.addf %51, %63 : vector<8x128xf32>
    %65 = vector.extract_strided_slice %15 {offsets = [3, 0], sizes = [1, 128], strides = [1, 1]} : vector<8x128xf32> to vector<1x128xf32>
    %66 = vector.broadcast %65 : vector<1x128xf32> to vector<8x128xf32>
    %67 = arith.mulf %60, %66 : vector<8x128xf32>
    %68 = arith.addf %55, %67 : vector<8x128xf32>
    %69 = vector.extract_strided_slice %17 {offsets = [3, 0], sizes = [1, 128], strides = [1, 1]} : vector<8x128xf32> to vector<1x128xf32>
    %70 = vector.broadcast %69 : vector<1x128xf32> to vector<8x128xf32>
    %71 = arith.mulf %60, %70 : vector<8x128xf32>
    %72 = arith.addf %59, %71 : vector<8x128xf32>
    %73 = vector.extract_strided_slice %11 {offsets = [0, 512], sizes = [8, 128], strides = [1, 1]} : vector<8x1024xf32> to vector<8x128xf32>
    %74 = vector.extract_strided_slice %13 {offsets = [4, 0], sizes = [1, 128], strides = [1, 1]} : vector<8x128xf32> to vector<1x128xf32>
    %75 = vector.broadcast %74 : vector<1x128xf32> to vector<8x128xf32>
    %76 = arith.mulf %73, %75 : vector<8x128xf32>
    %77 = arith.addf %64, %76 : vector<8x128xf32>
    %78 = vector.extract_strided_slice %15 {offsets = [4, 0], sizes = [1, 128], strides = [1, 1]} : vector<8x128xf32> to vector<1x128xf32>
    %79 = vector.broadcast %78 : vector<1x128xf32> to vector<8x128xf32>
    %80 = arith.mulf %73, %79 : vector<8x128xf32>
    %81 = arith.addf %68, %80 : vector<8x128xf32>
    %82 = vector.extract_strided_slice %17 {offsets = [4, 0], sizes = [1, 128], strides = [1, 1]} : vector<8x128xf32> to vector<1x128xf32>
    %83 = vector.broadcast %82 : vector<1x128xf32> to vector<8x128xf32>
    %84 = arith.mulf %73, %83 : vector<8x128xf32>
    %85 = arith.addf %72, %84 : vector<8x128xf32>
    %86 = vector.extract_strided_slice %11 {offsets = [0, 640], sizes = [8, 128], strides = [1, 1]} : vector<8x1024xf32> to vector<8x128xf32>
    %87 = vector.extract_strided_slice %13 {offsets = [5, 0], sizes = [1, 128], strides = [1, 1]} : vector<8x128xf32> to vector<1x128xf32>
    %88 = vector.broadcast %87 : vector<1x128xf32> to vector<8x128xf32>
    %89 = arith.mulf %86, %88 : vector<8x128xf32>
    %90 = arith.addf %77, %89 : vector<8x128xf32>
    %91 = vector.extract_strided_slice %15 {offsets = [5, 0], sizes = [1, 128], strides = [1, 1]} : vector<8x128xf32> to vector<1x128xf32>
    %92 = vector.broadcast %91 : vector<1x128xf32> to vector<8x128xf32>
    %93 = arith.mulf %86, %92 : vector<8x128xf32>
    %94 = arith.addf %81, %93 : vector<8x128xf32>
    %95 = vector.extract_strided_slice %17 {offsets = [5, 0], sizes = [1, 128], strides = [1, 1]} : vector<8x128xf32> to vector<1x128xf32>
    %96 = vector.broadcast %95 : vector<1x128xf32> to vector<8x128xf32>
    %97 = arith.mulf %86, %96 : vector<8x128xf32>
    %98 = arith.addf %85, %97 : vector<8x128xf32>
    %99 = vector.extract_strided_slice %11 {offsets = [0, 768], sizes = [8, 128], strides = [1, 1]} : vector<8x1024xf32> to vector<8x128xf32>
    %100 = vector.extract_strided_slice %13 {offsets = [6, 0], sizes = [1, 128], strides = [1, 1]} : vector<8x128xf32> to vector<1x128xf32>
    %101 = vector.broadcast %100 : vector<1x128xf32> to vector<8x128xf32>
    %102 = arith.mulf %99, %101 : vector<8x128xf32>
    %103 = arith.addf %90, %102 : vector<8x128xf32>
    %104 = vector.extract_strided_slice %15 {offsets = [6, 0], sizes = [1, 128], strides = [1, 1]} : vector<8x128xf32> to vector<1x128xf32>
    %105 = vector.broadcast %104 : vector<1x128xf32> to vector<8x128xf32>
    %106 = arith.mulf %99, %105 : vector<8x128xf32>
    %107 = arith.addf %94, %106 : vector<8x128xf32>
    %108 = vector.extract_strided_slice %17 {offsets = [6, 0], sizes = [1, 128], strides = [1, 1]} : vector<8x128xf32> to vector<1x128xf32>
    %109 = vector.broadcast %108 : vector<1x128xf32> to vector<8x128xf32>
    %110 = arith.mulf %99, %109 : vector<8x128xf32>
    %111 = arith.addf %98, %110 : vector<8x128xf32>
    %112 = vector.extract_strided_slice %11 {offsets = [0, 896], sizes = [8, 128], strides = [1, 1]} : vector<8x1024xf32> to vector<8x128xf32>
    %113 = vector.extract_strided_slice %13 {offsets = [7, 0], sizes = [1, 128], strides = [1, 1]} : vector<8x128xf32> to vector<1x128xf32>
    %114 = vector.broadcast %113 : vector<1x128xf32> to vector<8x128xf32>
    %115 = arith.mulf %112, %114 : vector<8x128xf32>
    %116 = arith.addf %103, %115 : vector<8x128xf32>
    %117 = vector.extract_strided_slice %15 {offsets = [7, 0], sizes = [1, 128], strides = [1, 1]} : vector<8x128xf32> to vector<1x128xf32>
    %118 = vector.broadcast %117 : vector<1x128xf32> to vector<8x128xf32>
    %119 = arith.mulf %112, %118 : vector<8x128xf32>
    %120 = arith.addf %107, %119 : vector<8x128xf32>
    %121 = vector.extract_strided_slice %17 {offsets = [7, 0], sizes = [1, 128], strides = [1, 1]} : vector<8x128xf32> to vector<1x128xf32>
    %122 = vector.broadcast %121 : vector<1x128xf32> to vector<8x128xf32>
    %123 = arith.mulf %112, %122 : vector<8x128xf32>
    %124 = arith.addf %111, %123 : vector<8x128xf32>
    %125 = tpu.concatenate %116, %120, %124 in 0 : vector<8x128xf32>, vector<8x128xf32>, vector<8x128xf32> -> vector<24x128xf32>
    %126 = vector.extract_strided_slice %10 {offsets = [8, 0], sizes = [8, 1024], strides = [1, 1]} : vector<32x1024xf32> to vector<8x1024xf32>
    %c0_21 = arith.constant 0 : index
    %c1_22 = arith.constant 1 : index
    %c0_23 = arith.constant 0 : index
    %c0_24 = arith.constant 0 : index
    %c0_25 = arith.constant 0 : index
    %127 = vector.load %arg4[%c0_21, %c1_22, %c0_23, %c0_24, %c0_25] : memref<1x4x3x8x128xf32, #tpu.memory_space<vmem>>, vector<1x1x1x8x128xf32>
    %128 = vector.shape_cast %127 : vector<1x1x1x8x128xf32> to vector<8x128xf32>
    %c0_26 = arith.constant 0 : index
    %c1_27 = arith.constant 1 : index
    %c1_28 = arith.constant 1 : index
    %c0_29 = arith.constant 0 : index
    %c0_30 = arith.constant 0 : index
    %129 = vector.load %arg4[%c0_26, %c1_27, %c1_28, %c0_29, %c0_30] : memref<1x4x3x8x128xf32, #tpu.memory_space<vmem>>, vector<1x1x1x8x128xf32>
    %130 = vector.shape_cast %129 : vector<1x1x1x8x128xf32> to vector<8x128xf32>
    %c0_31 = arith.constant 0 : index
    %c1_32 = arith.constant 1 : index
    %c2_33 = arith.constant 2 : index
    %c0_34 = arith.constant 0 : index
    %c0_35 = arith.constant 0 : index
    %131 = vector.load %arg4[%c0_31, %c1_32, %c2_33, %c0_34, %c0_35] : memref<1x4x3x8x128xf32, #tpu.memory_space<vmem>>, vector<1x1x1x8x128xf32>
    %132 = vector.shape_cast %131 : vector<1x1x1x8x128xf32> to vector<8x128xf32>
    %cst_36 = arith.constant 0.000000e+00 : f32
    %133 = vector.broadcast %cst_36 : f32 to vector<8x128xf32>
    %cst_37 = arith.constant 0.000000e+00 : f32
    %134 = vector.broadcast %cst_37 : f32 to vector<8x128xf32>
    %cst_38 = arith.constant 0.000000e+00 : f32
    %135 = vector.broadcast %cst_38 : f32 to vector<8x128xf32>
    %136 = vector.extract_strided_slice %126 {offsets = [0, 0], sizes = [8, 128], strides = [1, 1]} : vector<8x1024xf32> to vector<8x128xf32>
    %137 = vector.extract_strided_slice %128 {offsets = [0, 0], sizes = [1, 128], strides = [1, 1]} : vector<8x128xf32> to vector<1x128xf32>
    %138 = vector.broadcast %137 : vector<1x128xf32> to vector<8x128xf32>
    %139 = arith.mulf %136, %138 : vector<8x128xf32>
    %140 = arith.addf %133, %139 : vector<8x128xf32>
    %141 = vector.extract_strided_slice %130 {offsets = [0, 0], sizes = [1, 128], strides = [1, 1]} : vector<8x128xf32> to vector<1x128xf32>
    %142 = vector.broadcast %141 : vector<1x128xf32> to vector<8x128xf32>
    %143 = arith.mulf %136, %142 : vector<8x128xf32>
    %144 = arith.addf %134, %143 : vector<8x128xf32>
    %145 = vector.extract_strided_slice %132 {offsets = [0, 0], sizes = [1, 128], strides = [1, 1]} : vector<8x128xf32> to vector<1x128xf32>
    %146 = vector.broadcast %145 : vector<1x128xf32> to vector<8x128xf32>
    %147 = arith.mulf %136, %146 : vector<8x128xf32>
    %148 = arith.addf %135, %147 : vector<8x128xf32>
    %149 = vector.extract_strided_slice %126 {offsets = [0, 128], sizes = [8, 128], strides = [1, 1]} : vector<8x1024xf32> to vector<8x128xf32>
    %150 = vector.extract_strided_slice %128 {offsets = [1, 0], sizes = [1, 128], strides = [1, 1]} : vector<8x128xf32> to vector<1x128xf32>
    %151 = vector.broadcast %150 : vector<1x128xf32> to vector<8x128xf32>
    %152 = arith.mulf %149, %151 : vector<8x128xf32>
    %153 = arith.addf %140, %152 : vector<8x128xf32>
    %154 = vector.extract_strided_slice %130 {offsets = [1, 0], sizes = [1, 128], strides = [1, 1]} : vector<8x128xf32> to vector<1x128xf32>
    %155 = vector.broadcast %154 : vector<1x128xf32> to vector<8x128xf32>
    %156 = arith.mulf %149, %155 : vector<8x128xf32>
    %157 = arith.addf %144, %156 : vector<8x128xf32>
    %158 = vector.extract_strided_slice %132 {offsets = [1, 0], sizes = [1, 128], strides = [1, 1]} : vector<8x128xf32> to vector<1x128xf32>
    %159 = vector.broadcast %158 : vector<1x128xf32> to vector<8x128xf32>
    %160 = arith.mulf %149, %159 : vector<8x128xf32>
    %161 = arith.addf %148, %160 : vector<8x128xf32>
    %162 = vector.extract_strided_slice %126 {offsets = [0, 256], sizes = [8, 128], strides = [1, 1]} : vector<8x1024xf32> to vector<8x128xf32>
    %163 = vector.extract_strided_slice %128 {offsets = [2, 0], sizes = [1, 128], strides = [1, 1]} : vector<8x128xf32> to vector<1x128xf32>
    %164 = vector.broadcast %163 : vector<1x128xf32> to vector<8x128xf32>
    %165 = arith.mulf %162, %164 : vector<8x128xf32>
    %166 = arith.addf %153, %165 : vector<8x128xf32>
    %167 = vector.extract_strided_slice %130 {offsets = [2, 0], sizes = [1, 128], strides = [1, 1]} : vector<8x128xf32> to vector<1x128xf32>
    %168 = vector.broadcast %167 : vector<1x128xf32> to vector<8x128xf32>
    %169 = arith.mulf %162, %168 : vector<8x128xf32>
    %170 = arith.addf %157, %169 : vector<8x128xf32>
    %171 = vector.extract_strided_slice %132 {offsets = [2, 0], sizes = [1, 128], strides = [1, 1]} : vector<8x128xf32> to vector<1x128xf32>
    %172 = vector.broadcast %171 : vector<1x128xf32> to vector<8x128xf32>
    %173 = arith.mulf %162, %172 : vector<8x128xf32>
    %174 = arith.addf %161, %173 : vector<8x128xf32>
    %175 = vector.extract_strided_slice %126 {offsets = [0, 384], sizes = [8, 128], strides = [1, 1]} : vector<8x1024xf32> to vector<8x128xf32>
    %176 = vector.extract_strided_slice %128 {offsets = [3, 0], sizes = [1, 128], strides = [1, 1]} : vector<8x128xf32> to vector<1x128xf32>
    %177 = vector.broadcast %176 : vector<1x128xf32> to vector<8x128xf32>
    %178 = arith.mulf %175, %177 : vector<8x128xf32>
    %179 = arith.addf %166, %178 : vector<8x128xf32>
    %180 = vector.extract_strided_slice %130 {offsets = [3, 0], sizes = [1, 128], strides = [1, 1]} : vector<8x128xf32> to vector<1x128xf32>
    %181 = vector.broadcast %180 : vector<1x128xf32> to vector<8x128xf32>
    %182 = arith.mulf %175, %181 : vector<8x128xf32>
    %183 = arith.addf %170, %182 : vector<8x128xf32>
    %184 = vector.extract_strided_slice %132 {offsets = [3, 0], sizes = [1, 128], strides = [1, 1]} : vector<8x128xf32> to vector<1x128xf32>
    %185 = vector.broadcast %184 : vector<1x128xf32> to vector<8x128xf32>
    %186 = arith.mulf %175, %185 : vector<8x128xf32>
    %187 = arith.addf %174, %186 : vector<8x128xf32>
    %188 = vector.extract_strided_slice %126 {offsets = [0, 512], sizes = [8, 128], strides = [1, 1]} : vector<8x1024xf32> to vector<8x128xf32>
    %189 = vector.extract_strided_slice %128 {offsets = [4, 0], sizes = [1, 128], strides = [1, 1]} : vector<8x128xf32> to vector<1x128xf32>
    %190 = vector.broadcast %189 : vector<1x128xf32> to vector<8x128xf32>
    %191 = arith.mulf %188, %190 : vector<8x128xf32>
    %192 = arith.addf %179, %191 : vector<8x128xf32>
    %193 = vector.extract_strided_slice %130 {offsets = [4, 0], sizes = [1, 128], strides = [1, 1]} : vector<8x128xf32> to vector<1x128xf32>
    %194 = vector.broadcast %193 : vector<1x128xf32> to vector<8x128xf32>
    %195 = arith.mulf %188, %194 : vector<8x128xf32>
    %196 = arith.addf %183, %195 : vector<8x128xf32>
    %197 = vector.extract_strided_slice %132 {offsets = [4, 0], sizes = [1, 128], strides = [1, 1]} : vector<8x128xf32> to vector<1x128xf32>
    %198 = vector.broadcast %197 : vector<1x128xf32> to vector<8x128xf32>
    %199 = arith.mulf %188, %198 : vector<8x128xf32>
    %200 = arith.addf %187, %199 : vector<8x128xf32>
    %201 = vector.extract_strided_slice %126 {offsets = [0, 640], sizes = [8, 128], strides = [1, 1]} : vector<8x1024xf32> to vector<8x128xf32>
    %202 = vector.extract_strided_slice %128 {offsets = [5, 0], sizes = [1, 128], strides = [1, 1]} : vector<8x128xf32> to vector<1x128xf32>
    %203 = vector.broadcast %202 : vector<1x128xf32> to vector<8x128xf32>
    %204 = arith.mulf %201, %203 : vector<8x128xf32>
    %205 = arith.addf %192, %204 : vector<8x128xf32>
    %206 = vector.extract_strided_slice %130 {offsets = [5, 0], sizes = [1, 128], strides = [1, 1]} : vector<8x128xf32> to vector<1x128xf32>
    %207 = vector.broadcast %206 : vector<1x128xf32> to vector<8x128xf32>
    %208 = arith.mulf %201, %207 : vector<8x128xf32>
    %209 = arith.addf %196, %208 : vector<8x128xf32>
    %210 = vector.extract_strided_slice %132 {offsets = [5, 0], sizes = [1, 128], strides = [1, 1]} : vector<8x128xf32> to vector<1x128xf32>
    %211 = vector.broadcast %210 : vector<1x128xf32> to vector<8x128xf32>
    %212 = arith.mulf %201, %211 : vector<8x128xf32>
    %213 = arith.addf %200, %212 : vector<8x128xf32>
    %214 = vector.extract_strided_slice %126 {offsets = [0, 768], sizes = [8, 128], strides = [1, 1]} : vector<8x1024xf32> to vector<8x128xf32>
    %215 = vector.extract_strided_slice %128 {offsets = [6, 0], sizes = [1, 128], strides = [1, 1]} : vector<8x128xf32> to vector<1x128xf32>
    %216 = vector.broadcast %215 : vector<1x128xf32> to vector<8x128xf32>
    %217 = arith.mulf %214, %216 : vector<8x128xf32>
    %218 = arith.addf %205, %217 : vector<8x128xf32>
    %219 = vector.extract_strided_slice %130 {offsets = [6, 0], sizes = [1, 128], strides = [1, 1]} : vector<8x128xf32> to vector<1x128xf32>
    %220 = vector.broadcast %219 : vector<1x128xf32> to vector<8x128xf32>
    %221 = arith.mulf %214, %220 : vector<8x128xf32>
    %222 = arith.addf %209, %221 : vector<8x128xf32>
    %223 = vector.extract_strided_slice %132 {offsets = [6, 0], sizes = [1, 128], strides = [1, 1]} : vector<8x128xf32> to vector<1x128xf32>
    %224 = vector.broadcast %223 : vector<1x128xf32> to vector<8x128xf32>
    %225 = arith.mulf %214, %224 : vector<8x128xf32>
    %226 = arith.addf %213, %225 : vector<8x128xf32>
    %227 = vector.extract_strided_slice %126 {offsets = [0, 896], sizes = [8, 128], strides = [1, 1]} : vector<8x1024xf32> to vector<8x128xf32>
    %228 = vector.extract_strided_slice %128 {offsets = [7, 0], sizes = [1, 128], strides = [1, 1]} : vector<8x128xf32> to vector<1x128xf32>
    %229 = vector.broadcast %228 : vector<1x128xf32> to vector<8x128xf32>
    %230 = arith.mulf %227, %229 : vector<8x128xf32>
    %231 = arith.addf %218, %230 : vector<8x128xf32>
    %232 = vector.extract_strided_slice %130 {offsets = [7, 0], sizes = [1, 128], strides = [1, 1]} : vector<8x128xf32> to vector<1x128xf32>
    %233 = vector.broadcast %232 : vector<1x128xf32> to vector<8x128xf32>
    %234 = arith.mulf %227, %233 : vector<8x128xf32>
    %235 = arith.addf %222, %234 : vector<8x128xf32>
    %236 = vector.extract_strided_slice %132 {offsets = [7, 0], sizes = [1, 128], strides = [1, 1]} : vector<8x128xf32> to vector<1x128xf32>
    %237 = vector.broadcast %236 : vector<1x128xf32> to vector<8x128xf32>
    %238 = arith.mulf %227, %237 : vector<8x128xf32>
    %239 = arith.addf %226, %238 : vector<8x128xf32>
    %240 = tpu.concatenate %231, %235, %239 in 0 : vector<8x128xf32>, vector<8x128xf32>, vector<8x128xf32> -> vector<24x128xf32>
    %241 = vector.extract_strided_slice %10 {offsets = [16, 0], sizes = [8, 1024], strides = [1, 1]} : vector<32x1024xf32> to vector<8x1024xf32>
    %c0_39 = arith.constant 0 : index
    %c2_40 = arith.constant 2 : index
    %c0_41 = arith.constant 0 : index
    %c0_42 = arith.constant 0 : index
    %c0_43 = arith.constant 0 : index
    %242 = vector.load %arg4[%c0_39, %c2_40, %c0_41, %c0_42, %c0_43] : memref<1x4x3x8x128xf32, #tpu.memory_space<vmem>>, vector<1x1x1x8x128xf32>
    %243 = vector.shape_cast %242 : vector<1x1x1x8x128xf32> to vector<8x128xf32>
    %c0_44 = arith.constant 0 : index
    %c2_45 = arith.constant 2 : index
    %c1_46 = arith.constant 1 : index
    %c0_47 = arith.constant 0 : index
    %c0_48 = arith.constant 0 : index
    %244 = vector.load %arg4[%c0_44, %c2_45, %c1_46, %c0_47, %c0_48] : memref<1x4x3x8x128xf32, #tpu.memory_space<vmem>>, vector<1x1x1x8x128xf32>
    %245 = vector.shape_cast %244 : vector<1x1x1x8x128xf32> to vector<8x128xf32>
    %c0_49 = arith.constant 0 : index
    %c2_50 = arith.constant 2 : index
    %c2_51 = arith.constant 2 : index
    %c0_52 = arith.constant 0 : index
    %c0_53 = arith.constant 0 : index
    %246 = vector.load %arg4[%c0_49, %c2_50, %c2_51, %c0_52, %c0_53] : memref<1x4x3x8x128xf32, #tpu.memory_space<vmem>>, vector<1x1x1x8x128xf32>
    %247 = vector.shape_cast %246 : vector<1x1x1x8x128xf32> to vector<8x128xf32>
    %cst_54 = arith.constant 0.000000e+00 : f32
    %248 = vector.broadcast %cst_54 : f32 to vector<8x128xf32>
    %cst_55 = arith.constant 0.000000e+00 : f32
    %249 = vector.broadcast %cst_55 : f32 to vector<8x128xf32>
    %cst_56 = arith.constant 0.000000e+00 : f32
    %250 = vector.broadcast %cst_56 : f32 to vector<8x128xf32>
    %251 = vector.extract_strided_slice %241 {offsets = [0, 0], sizes = [8, 128], strides = [1, 1]} : vector<8x1024xf32> to vector<8x128xf32>
    %252 = vector.extract_strided_slice %243 {offsets = [0, 0], sizes = [1, 128], strides = [1, 1]} : vector<8x128xf32> to vector<1x128xf32>
    %253 = vector.broadcast %252 : vector<1x128xf32> to vector<8x128xf32>
    %254 = arith.mulf %251, %253 : vector<8x128xf32>
    %255 = arith.addf %248, %254 : vector<8x128xf32>
    %256 = vector.extract_strided_slice %245 {offsets = [0, 0], sizes = [1, 128], strides = [1, 1]} : vector<8x128xf32> to vector<1x128xf32>
    %257 = vector.broadcast %256 : vector<1x128xf32> to vector<8x128xf32>
    %258 = arith.mulf %251, %257 : vector<8x128xf32>
    %259 = arith.addf %249, %258 : vector<8x128xf32>
    %260 = vector.extract_strided_slice %247 {offsets = [0, 0], sizes = [1, 128], strides = [1, 1]} : vector<8x128xf32> to vector<1x128xf32>
    %261 = vector.broadcast %260 : vector<1x128xf32> to vector<8x128xf32>
    %262 = arith.mulf %251, %261 : vector<8x128xf32>
    %263 = arith.addf %250, %262 : vector<8x128xf32>
    %264 = vector.extract_strided_slice %241 {offsets = [0, 128], sizes = [8, 128], strides = [1, 1]} : vector<8x1024xf32> to vector<8x128xf32>
    %265 = vector.extract_strided_slice %243 {offsets = [1, 0], sizes = [1, 128], strides = [1, 1]} : vector<8x128xf32> to vector<1x128xf32>
    %266 = vector.broadcast %265 : vector<1x128xf32> to vector<8x128xf32>
    %267 = arith.mulf %264, %266 : vector<8x128xf32>
    %268 = arith.addf %255, %267 : vector<8x128xf32>
    %269 = vector.extract_strided_slice %245 {offsets = [1, 0], sizes = [1, 128], strides = [1, 1]} : vector<8x128xf32> to vector<1x128xf32>
    %270 = vector.broadcast %269 : vector<1x128xf32> to vector<8x128xf32>
    %271 = arith.mulf %264, %270 : vector<8x128xf32>
    %272 = arith.addf %259, %271 : vector<8x128xf32>
    %273 = vector.extract_strided_slice %247 {offsets = [1, 0], sizes = [1, 128], strides = [1, 1]} : vector<8x128xf32> to vector<1x128xf32>
    %274 = vector.broadcast %273 : vector<1x128xf32> to vector<8x128xf32>
    %275 = arith.mulf %264, %274 : vector<8x128xf32>
    %276 = arith.addf %263, %275 : vector<8x128xf32>
    %277 = vector.extract_strided_slice %241 {offsets = [0, 256], sizes = [8, 128], strides = [1, 1]} : vector<8x1024xf32> to vector<8x128xf32>
    %278 = vector.extract_strided_slice %243 {offsets = [2, 0], sizes = [1, 128], strides = [1, 1]} : vector<8x128xf32> to vector<1x128xf32>
    %279 = vector.broadcast %278 : vector<1x128xf32> to vector<8x128xf32>
    %280 = arith.mulf %277, %279 : vector<8x128xf32>
    %281 = arith.addf %268, %280 : vector<8x128xf32>
    %282 = vector.extract_strided_slice %245 {offsets = [2, 0], sizes = [1, 128], strides = [1, 1]} : vector<8x128xf32> to vector<1x128xf32>
    %283 = vector.broadcast %282 : vector<1x128xf32> to vector<8x128xf32>
    %284 = arith.mulf %277, %283 : vector<8x128xf32>
    %285 = arith.addf %272, %284 : vector<8x128xf32>
    %286 = vector.extract_strided_slice %247 {offsets = [2, 0], sizes = [1, 128], strides = [1, 1]} : vector<8x128xf32> to vector<1x128xf32>
    %287 = vector.broadcast %286 : vector<1x128xf32> to vector<8x128xf32>
    %288 = arith.mulf %277, %287 : vector<8x128xf32>
    %289 = arith.addf %276, %288 : vector<8x128xf32>
    %290 = vector.extract_strided_slice %241 {offsets = [0, 384], sizes = [8, 128], strides = [1, 1]} : vector<8x1024xf32> to vector<8x128xf32>
    %291 = vector.extract_strided_slice %243 {offsets = [3, 0], sizes = [1, 128], strides = [1, 1]} : vector<8x128xf32> to vector<1x128xf32>
    %292 = vector.broadcast %291 : vector<1x128xf32> to vector<8x128xf32>
    %293 = arith.mulf %290, %292 : vector<8x128xf32>
    %294 = arith.addf %281, %293 : vector<8x128xf32>
    %295 = vector.extract_strided_slice %245 {offsets = [3, 0], sizes = [1, 128], strides = [1, 1]} : vector<8x128xf32> to vector<1x128xf32>
    %296 = vector.broadcast %295 : vector<1x128xf32> to vector<8x128xf32>
    %297 = arith.mulf %290, %296 : vector<8x128xf32>
    %298 = arith.addf %285, %297 : vector<8x128xf32>
    %299 = vector.extract_strided_slice %247 {offsets = [3, 0], sizes = [1, 128], strides = [1, 1]} : vector<8x128xf32> to vector<1x128xf32>
    %300 = vector.broadcast %299 : vector<1x128xf32> to vector<8x128xf32>
    %301 = arith.mulf %290, %300 : vector<8x128xf32>
    %302 = arith.addf %289, %301 : vector<8x128xf32>
    %303 = vector.extract_strided_slice %241 {offsets = [0, 512], sizes = [8, 128], strides = [1, 1]} : vector<8x1024xf32> to vector<8x128xf32>
    %304 = vector.extract_strided_slice %243 {offsets = [4, 0], sizes = [1, 128], strides = [1, 1]} : vector<8x128xf32> to vector<1x128xf32>
    %305 = vector.broadcast %304 : vector<1x128xf32> to vector<8x128xf32>
    %306 = arith.mulf %303, %305 : vector<8x128xf32>
    %307 = arith.addf %294, %306 : vector<8x128xf32>
    %308 = vector.extract_strided_slice %245 {offsets = [4, 0], sizes = [1, 128], strides = [1, 1]} : vector<8x128xf32> to vector<1x128xf32>
    %309 = vector.broadcast %308 : vector<1x128xf32> to vector<8x128xf32>
    %310 = arith.mulf %303, %309 : vector<8x128xf32>
    %311 = arith.addf %298, %310 : vector<8x128xf32>
    %312 = vector.extract_strided_slice %247 {offsets = [4, 0], sizes = [1, 128], strides = [1, 1]} : vector<8x128xf32> to vector<1x128xf32>
    %313 = vector.broadcast %312 : vector<1x128xf32> to vector<8x128xf32>
    %314 = arith.mulf %303, %313 : vector<8x128xf32>
    %315 = arith.addf %302, %314 : vector<8x128xf32>
    %316 = vector.extract_strided_slice %241 {offsets = [0, 640], sizes = [8, 128], strides = [1, 1]} : vector<8x1024xf32> to vector<8x128xf32>
    %317 = vector.extract_strided_slice %243 {offsets = [5, 0], sizes = [1, 128], strides = [1, 1]} : vector<8x128xf32> to vector<1x128xf32>
    %318 = vector.broadcast %317 : vector<1x128xf32> to vector<8x128xf32>
    %319 = arith.mulf %316, %318 : vector<8x128xf32>
    %320 = arith.addf %307, %319 : vector<8x128xf32>
    %321 = vector.extract_strided_slice %245 {offsets = [5, 0], sizes = [1, 128], strides = [1, 1]} : vector<8x128xf32> to vector<1x128xf32>
    %322 = vector.broadcast %321 : vector<1x128xf32> to vector<8x128xf32>
    %323 = arith.mulf %316, %322 : vector<8x128xf32>
    %324 = arith.addf %311, %323 : vector<8x128xf32>
    %325 = vector.extract_strided_slice %247 {offsets = [5, 0], sizes = [1, 128], strides = [1, 1]} : vector<8x128xf32> to vector<1x128xf32>
    %326 = vector.broadcast %325 : vector<1x128xf32> to vector<8x128xf32>
    %327 = arith.mulf %316, %326 : vector<8x128xf32>
    %328 = arith.addf %315, %327 : vector<8x128xf32>
    %329 = vector.extract_strided_slice %241 {offsets = [0, 768], sizes = [8, 128], strides = [1, 1]} : vector<8x1024xf32> to vector<8x128xf32>
    %330 = vector.extract_strided_slice %243 {offsets = [6, 0], sizes = [1, 128], strides = [1, 1]} : vector<8x128xf32> to vector<1x128xf32>
    %331 = vector.broadcast %330 : vector<1x128xf32> to vector<8x128xf32>
    %332 = arith.mulf %329, %331 : vector<8x128xf32>
    %333 = arith.addf %320, %332 : vector<8x128xf32>
    %334 = vector.extract_strided_slice %245 {offsets = [6, 0], sizes = [1, 128], strides = [1, 1]} : vector<8x128xf32> to vector<1x128xf32>
    %335 = vector.broadcast %334 : vector<1x128xf32> to vector<8x128xf32>
    %336 = arith.mulf %329, %335 : vector<8x128xf32>
    %337 = arith.addf %324, %336 : vector<8x128xf32>
    %338 = vector.extract_strided_slice %247 {offsets = [6, 0], sizes = [1, 128], strides = [1, 1]} : vector<8x128xf32> to vector<1x128xf32>
    %339 = vector.broadcast %338 : vector<1x128xf32> to vector<8x128xf32>
    %340 = arith.mulf %329, %339 : vector<8x128xf32>
    %341 = arith.addf %328, %340 : vector<8x128xf32>
    %342 = vector.extract_strided_slice %241 {offsets = [0, 896], sizes = [8, 128], strides = [1, 1]} : vector<8x1024xf32> to vector<8x128xf32>
    %343 = vector.extract_strided_slice %243 {offsets = [7, 0], sizes = [1, 128], strides = [1, 1]} : vector<8x128xf32> to vector<1x128xf32>
    %344 = vector.broadcast %343 : vector<1x128xf32> to vector<8x128xf32>
    %345 = arith.mulf %342, %344 : vector<8x128xf32>
    %346 = arith.addf %333, %345 : vector<8x128xf32>
    %347 = vector.extract_strided_slice %245 {offsets = [7, 0], sizes = [1, 128], strides = [1, 1]} : vector<8x128xf32> to vector<1x128xf32>
    %348 = vector.broadcast %347 : vector<1x128xf32> to vector<8x128xf32>
    %349 = arith.mulf %342, %348 : vector<8x128xf32>
    %350 = arith.addf %337, %349 : vector<8x128xf32>
    %351 = vector.extract_strided_slice %247 {offsets = [7, 0], sizes = [1, 128], strides = [1, 1]} : vector<8x128xf32> to vector<1x128xf32>
    %352 = vector.broadcast %351 : vector<1x128xf32> to vector<8x128xf32>
    %353 = arith.mulf %342, %352 : vector<8x128xf32>
    %354 = arith.addf %341, %353 : vector<8x128xf32>
    %355 = tpu.concatenate %346, %350, %354 in 0 : vector<8x128xf32>, vector<8x128xf32>, vector<8x128xf32> -> vector<24x128xf32>
    %356 = vector.extract_strided_slice %10 {offsets = [24, 0], sizes = [8, 1024], strides = [1, 1]} : vector<32x1024xf32> to vector<8x1024xf32>
    %c0_57 = arith.constant 0 : index
    %c3 = arith.constant 3 : index
    %c0_58 = arith.constant 0 : index
    %c0_59 = arith.constant 0 : index
    %c0_60 = arith.constant 0 : index
    %357 = vector.load %arg4[%c0_57, %c3, %c0_58, %c0_59, %c0_60] : memref<1x4x3x8x128xf32, #tpu.memory_space<vmem>>, vector<1x1x1x8x128xf32>
    %358 = vector.shape_cast %357 : vector<1x1x1x8x128xf32> to vector<8x128xf32>
    %c0_61 = arith.constant 0 : index
    %c3_62 = arith.constant 3 : index
    %c1_63 = arith.constant 1 : index
    %c0_64 = arith.constant 0 : index
    %c0_65 = arith.constant 0 : index
    %359 = vector.load %arg4[%c0_61, %c3_62, %c1_63, %c0_64, %c0_65] : memref<1x4x3x8x128xf32, #tpu.memory_space<vmem>>, vector<1x1x1x8x128xf32>
    %360 = vector.shape_cast %359 : vector<1x1x1x8x128xf32> to vector<8x128xf32>
    %c0_66 = arith.constant 0 : index
    %c3_67 = arith.constant 3 : index
    %c2_68 = arith.constant 2 : index
    %c0_69 = arith.constant 0 : index
    %c0_70 = arith.constant 0 : index
    %361 = vector.load %arg4[%c0_66, %c3_67, %c2_68, %c0_69, %c0_70] : memref<1x4x3x8x128xf32, #tpu.memory_space<vmem>>, vector<1x1x1x8x128xf32>
    %362 = vector.shape_cast %361 : vector<1x1x1x8x128xf32> to vector<8x128xf32>
    %cst_71 = arith.constant 0.000000e+00 : f32
    %363 = vector.broadcast %cst_71 : f32 to vector<8x128xf32>
    %cst_72 = arith.constant 0.000000e+00 : f32
    %364 = vector.broadcast %cst_72 : f32 to vector<8x128xf32>
    %cst_73 = arith.constant 0.000000e+00 : f32
    %365 = vector.broadcast %cst_73 : f32 to vector<8x128xf32>
    %366 = vector.extract_strided_slice %356 {offsets = [0, 0], sizes = [8, 128], strides = [1, 1]} : vector<8x1024xf32> to vector<8x128xf32>
    %367 = vector.extract_strided_slice %358 {offsets = [0, 0], sizes = [1, 128], strides = [1, 1]} : vector<8x128xf32> to vector<1x128xf32>
    %368 = vector.broadcast %367 : vector<1x128xf32> to vector<8x128xf32>
    %369 = arith.mulf %366, %368 : vector<8x128xf32>
    %370 = arith.addf %363, %369 : vector<8x128xf32>
    %371 = vector.extract_strided_slice %360 {offsets = [0, 0], sizes = [1, 128], strides = [1, 1]} : vector<8x128xf32> to vector<1x128xf32>
    %372 = vector.broadcast %371 : vector<1x128xf32> to vector<8x128xf32>
    %373 = arith.mulf %366, %372 : vector<8x128xf32>
    %374 = arith.addf %364, %373 : vector<8x128xf32>
    %375 = vector.extract_strided_slice %362 {offsets = [0, 0], sizes = [1, 128], strides = [1, 1]} : vector<8x128xf32> to vector<1x128xf32>
    %376 = vector.broadcast %375 : vector<1x128xf32> to vector<8x128xf32>
    %377 = arith.mulf %366, %376 : vector<8x128xf32>
    %378 = arith.addf %365, %377 : vector<8x128xf32>
    %379 = vector.extract_strided_slice %356 {offsets = [0, 128], sizes = [8, 128], strides = [1, 1]} : vector<8x1024xf32> to vector<8x128xf32>
    %380 = vector.extract_strided_slice %358 {offsets = [1, 0], sizes = [1, 128], strides = [1, 1]} : vector<8x128xf32> to vector<1x128xf32>
    %381 = vector.broadcast %380 : vector<1x128xf32> to vector<8x128xf32>
    %382 = arith.mulf %379, %381 : vector<8x128xf32>
    %383 = arith.addf %370, %382 : vector<8x128xf32>
    %384 = vector.extract_strided_slice %360 {offsets = [1, 0], sizes = [1, 128], strides = [1, 1]} : vector<8x128xf32> to vector<1x128xf32>
    %385 = vector.broadcast %384 : vector<1x128xf32> to vector<8x128xf32>
    %386 = arith.mulf %379, %385 : vector<8x128xf32>
    %387 = arith.addf %374, %386 : vector<8x128xf32>
    %388 = vector.extract_strided_slice %362 {offsets = [1, 0], sizes = [1, 128], strides = [1, 1]} : vector<8x128xf32> to vector<1x128xf32>
    %389 = vector.broadcast %388 : vector<1x128xf32> to vector<8x128xf32>
    %390 = arith.mulf %379, %389 : vector<8x128xf32>
    %391 = arith.addf %378, %390 : vector<8x128xf32>
    %392 = vector.extract_strided_slice %356 {offsets = [0, 256], sizes = [8, 128], strides = [1, 1]} : vector<8x1024xf32> to vector<8x128xf32>
    %393 = vector.extract_strided_slice %358 {offsets = [2, 0], sizes = [1, 128], strides = [1, 1]} : vector<8x128xf32> to vector<1x128xf32>
    %394 = vector.broadcast %393 : vector<1x128xf32> to vector<8x128xf32>
    %395 = arith.mulf %392, %394 : vector<8x128xf32>
    %396 = arith.addf %383, %395 : vector<8x128xf32>
    %397 = vector.extract_strided_slice %360 {offsets = [2, 0], sizes = [1, 128], strides = [1, 1]} : vector<8x128xf32> to vector<1x128xf32>
    %398 = vector.broadcast %397 : vector<1x128xf32> to vector<8x128xf32>
    %399 = arith.mulf %392, %398 : vector<8x128xf32>
    %400 = arith.addf %387, %399 : vector<8x128xf32>
    %401 = vector.extract_strided_slice %362 {offsets = [2, 0], sizes = [1, 128], strides = [1, 1]} : vector<8x128xf32> to vector<1x128xf32>
    %402 = vector.broadcast %401 : vector<1x128xf32> to vector<8x128xf32>
    %403 = arith.mulf %392, %402 : vector<8x128xf32>
    %404 = arith.addf %391, %403 : vector<8x128xf32>
    %405 = vector.extract_strided_slice %356 {offsets = [0, 384], sizes = [8, 128], strides = [1, 1]} : vector<8x1024xf32> to vector<8x128xf32>
    %406 = vector.extract_strided_slice %358 {offsets = [3, 0], sizes = [1, 128], strides = [1, 1]} : vector<8x128xf32> to vector<1x128xf32>
    %407 = vector.broadcast %406 : vector<1x128xf32> to vector<8x128xf32>
    %408 = arith.mulf %405, %407 : vector<8x128xf32>
    %409 = arith.addf %396, %408 : vector<8x128xf32>
    %410 = vector.extract_strided_slice %360 {offsets = [3, 0], sizes = [1, 128], strides = [1, 1]} : vector<8x128xf32> to vector<1x128xf32>
    %411 = vector.broadcast %410 : vector<1x128xf32> to vector<8x128xf32>
    %412 = arith.mulf %405, %411 : vector<8x128xf32>
    %413 = arith.addf %400, %412 : vector<8x128xf32>
    %414 = vector.extract_strided_slice %362 {offsets = [3, 0], sizes = [1, 128], strides = [1, 1]} : vector<8x128xf32> to vector<1x128xf32>
    %415 = vector.broadcast %414 : vector<1x128xf32> to vector<8x128xf32>
    %416 = arith.mulf %405, %415 : vector<8x128xf32>
    %417 = arith.addf %404, %416 : vector<8x128xf32>
    %418 = vector.extract_strided_slice %356 {offsets = [0, 512], sizes = [8, 128], strides = [1, 1]} : vector<8x1024xf32> to vector<8x128xf32>
    %419 = vector.extract_strided_slice %358 {offsets = [4, 0], sizes = [1, 128], strides = [1, 1]} : vector<8x128xf32> to vector<1x128xf32>
    %420 = vector.broadcast %419 : vector<1x128xf32> to vector<8x128xf32>
    %421 = arith.mulf %418, %420 : vector<8x128xf32>
    %422 = arith.addf %409, %421 : vector<8x128xf32>
    %423 = vector.extract_strided_slice %360 {offsets = [4, 0], sizes = [1, 128], strides = [1, 1]} : vector<8x128xf32> to vector<1x128xf32>
    %424 = vector.broadcast %423 : vector<1x128xf32> to vector<8x128xf32>
    %425 = arith.mulf %418, %424 : vector<8x128xf32>
    %426 = arith.addf %413, %425 : vector<8x128xf32>
    %427 = vector.extract_strided_slice %362 {offsets = [4, 0], sizes = [1, 128], strides = [1, 1]} : vector<8x128xf32> to vector<1x128xf32>
    %428 = vector.broadcast %427 : vector<1x128xf32> to vector<8x128xf32>
    %429 = arith.mulf %418, %428 : vector<8x128xf32>
    %430 = arith.addf %417, %429 : vector<8x128xf32>
    %431 = vector.extract_strided_slice %356 {offsets = [0, 640], sizes = [8, 128], strides = [1, 1]} : vector<8x1024xf32> to vector<8x128xf32>
    %432 = vector.extract_strided_slice %358 {offsets = [5, 0], sizes = [1, 128], strides = [1, 1]} : vector<8x128xf32> to vector<1x128xf32>
    %433 = vector.broadcast %432 : vector<1x128xf32> to vector<8x128xf32>
    %434 = arith.mulf %431, %433 : vector<8x128xf32>
    %435 = arith.addf %422, %434 : vector<8x128xf32>
    %436 = vector.extract_strided_slice %360 {offsets = [5, 0], sizes = [1, 128], strides = [1, 1]} : vector<8x128xf32> to vector<1x128xf32>
    %437 = vector.broadcast %436 : vector<1x128xf32> to vector<8x128xf32>
    %438 = arith.mulf %431, %437 : vector<8x128xf32>
    %439 = arith.addf %426, %438 : vector<8x128xf32>
    %440 = vector.extract_strided_slice %362 {offsets = [5, 0], sizes = [1, 128], strides = [1, 1]} : vector<8x128xf32> to vector<1x128xf32>
    %441 = vector.broadcast %440 : vector<1x128xf32> to vector<8x128xf32>
    %442 = arith.mulf %431, %441 : vector<8x128xf32>
    %443 = arith.addf %430, %442 : vector<8x128xf32>
    %444 = vector.extract_strided_slice %356 {offsets = [0, 768], sizes = [8, 128], strides = [1, 1]} : vector<8x1024xf32> to vector<8x128xf32>
    %445 = vector.extract_strided_slice %358 {offsets = [6, 0], sizes = [1, 128], strides = [1, 1]} : vector<8x128xf32> to vector<1x128xf32>
    %446 = vector.broadcast %445 : vector<1x128xf32> to vector<8x128xf32>
    %447 = arith.mulf %444, %446 : vector<8x128xf32>
    %448 = arith.addf %435, %447 : vector<8x128xf32>
    %449 = vector.extract_strided_slice %360 {offsets = [6, 0], sizes = [1, 128], strides = [1, 1]} : vector<8x128xf32> to vector<1x128xf32>
    %450 = vector.broadcast %449 : vector<1x128xf32> to vector<8x128xf32>
    %451 = arith.mulf %444, %450 : vector<8x128xf32>
    %452 = arith.addf %439, %451 : vector<8x128xf32>
    %453 = vector.extract_strided_slice %362 {offsets = [6, 0], sizes = [1, 128], strides = [1, 1]} : vector<8x128xf32> to vector<1x128xf32>
    %454 = vector.broadcast %453 : vector<1x128xf32> to vector<8x128xf32>
    %455 = arith.mulf %444, %454 : vector<8x128xf32>
    %456 = arith.addf %443, %455 : vector<8x128xf32>
    %457 = vector.extract_strided_slice %356 {offsets = [0, 896], sizes = [8, 128], strides = [1, 1]} : vector<8x1024xf32> to vector<8x128xf32>
    %458 = vector.extract_strided_slice %358 {offsets = [7, 0], sizes = [1, 128], strides = [1, 1]} : vector<8x128xf32> to vector<1x128xf32>
    %459 = vector.broadcast %458 : vector<1x128xf32> to vector<8x128xf32>
    %460 = arith.mulf %457, %459 : vector<8x128xf32>
    %461 = arith.addf %448, %460 : vector<8x128xf32>
    %462 = vector.extract_strided_slice %360 {offsets = [7, 0], sizes = [1, 128], strides = [1, 1]} : vector<8x128xf32> to vector<1x128xf32>
    %463 = vector.broadcast %462 : vector<1x128xf32> to vector<8x128xf32>
    %464 = arith.mulf %457, %463 : vector<8x128xf32>
    %465 = arith.addf %452, %464 : vector<8x128xf32>
    %466 = vector.extract_strided_slice %362 {offsets = [7, 0], sizes = [1, 128], strides = [1, 1]} : vector<8x128xf32> to vector<1x128xf32>
    %467 = vector.broadcast %466 : vector<1x128xf32> to vector<8x128xf32>
    %468 = arith.mulf %457, %467 : vector<8x128xf32>
    %469 = arith.addf %456, %468 : vector<8x128xf32>
    %470 = tpu.concatenate %461, %465, %469 in 0 : vector<8x128xf32>, vector<8x128xf32>, vector<8x128xf32> -> vector<24x128xf32>
    %471 = tpu.concatenate %125, %240, %355, %470 in 1 : vector<24x128xf32>, vector<24x128xf32>, vector<24x128xf32>, vector<24x128xf32> -> vector<24x512xf32>
    %c0_74 = arith.constant 0 : index
    %c0_75 = arith.constant 0 : index
    %472 = vector.load %arg5[%c0_74, %c0_75] : memref<8x24xf32, #tpu.memory_space<vmem>>, vector<8x24xf32>
    %cst_76 = arith.constant dense<0.000000e+00> : vector<8x512xf32>
    %473 = tpu.matmul %472, %471, %cst_76 {dimension_numbers = #tpu.dot_dimension_numbers<[1], [0], [0], [1], [0, 0, 1, 1], [], []>, precision = #tpu.contract_precision<fp32>} : vector<8x24xf32>, vector<24x512xf32>, vector<8x512xf32> -> vector<8x512xf32>
    %c0_77 = arith.constant 0 : index
    %c0_78 = arith.constant 0 : index
    %c0_79 = arith.constant 0 : index
    %474 = vector.load %arg6[%c0_77, %c0_78, %c0_79] : memref<1x8x512xf32, #tpu.memory_space<vmem>>, vector<1x8x512xf32>
    %475 = vector.shape_cast %474 : vector<1x8x512xf32> to vector<8x512xf32>
    %476 = vector.shape_cast %473 : vector<8x512xf32> to vector<1x8x512xf32>
    tpu.vector_store %arg6[%c0_77, %c0_78, %c0_79], %476 {strides = array<i32>} : memref<1x8x512xf32, #tpu.memory_space<vmem>>, vector<1x8x512xf32>,
    %cst_80 = arith.constant dense<0.000000e+00> : vector<8xf32>
    %477 = vector.multi_reduction <add>, %473, %cst_80 [1] : vector<8x512xf32> to vector<8xf32>
    %478 = vector.shape_cast %477 : vector<8xf32> to vector<8x1xf32>
    %c0_81 = arith.constant 0 : index
    %c0_82 = arith.constant 0 : index
    %c0_83 = arith.constant 0 : index
    %c0_84 = arith.constant 0 : index
    %479 = vector.load %arg7[%c0_81, %c0_82, %c0_83, %c0_84] : memref<1x1x8x1xf32, #tpu.memory_space<vmem>>, vector<1x1x8x1xf32>
    %480 = vector.shape_cast %479 : vector<1x1x8x1xf32> to vector<8x1xf32>
    %481 = vector.shape_cast %478 : vector<8x1xf32> to vector<1x1x8x1xf32>
    tpu.vector_store %arg7[%c0_81, %c0_82, %c0_83, %c0_84], %481 {strides = array<i32>} : memref<1x1x8x1xf32, #tpu.memory_space<vmem>>, vector<1x1x8x1xf32>,
    %482 = arith.mulf %473, %473 : vector<8x512xf32>
    %cst_85 = arith.constant dense<0.000000e+00> : vector<8xf32>
    %483 = vector.multi_reduction <add>, %482, %cst_85 [1] : vector<8x512xf32> to vector<8xf32>
    %484 = vector.shape_cast %483 : vector<8xf32> to vector<8x1xf32>
    %c0_86 = arith.constant 0 : index
    %c0_87 = arith.constant 0 : index
    %c0_88 = arith.constant 0 : index
    %c0_89 = arith.constant 0 : index
    %485 = vector.load %arg8[%c0_86, %c0_87, %c0_88, %c0_89] : memref<1x1x8x1xf32, #tpu.memory_space<vmem>>, vector<1x1x8x1xf32>
    %486 = vector.shape_cast %485 : vector<1x1x8x1xf32> to vector<8x1xf32>
    %487 = vector.shape_cast %484 : vector<8x1xf32> to vector<1x1x8x1xf32>
    tpu.vector_store %arg8[%c0_86, %c0_87, %c0_88, %c0_89], %487 {strides = array<i32>} : memref<1x1x8x1xf32, #tpu.memory_space<vmem>>, vector<1x1x8x1xf32>,
    return
  }
  func.func @transform_0(%arg0: i32, %arg1: i32) -> (i32, i32, i32) {
    %c0_i32 = arith.constant 0 : i32
    %c0_i32_0 = arith.constant 0 : i32
    %c0_i32_1 = arith.constant 0 : i32
    return %arg0, %c0_i32, %c0_i32_0 : i32, i32, i32
  }
  func.func @transform_1(%arg0: i32, %arg1: i32) -> (i32, i32, i32) {
    %c0_i32 = arith.constant 0 : i32
    %c0_i32_0 = arith.constant 0 : i32
    return %arg0, %arg1, %c0_i32 : i32, i32, i32
  }
  func.func @transform_2(%arg0: i32, %arg1: i32) -> (i32, i32, i32, i32, i32) {
    %c0_i32 = arith.constant 0 : i32
    %c0_i32_0 = arith.constant 0 : i32
    %c0_i32_1 = arith.constant 0 : i32
    %c0_i32_2 = arith.constant 0 : i32
    return %arg0, %arg1, %c0_i32, %c0_i32_0, %c0_i32_1 : i32, i32, i32, i32, i32
  }
  func.func @transform_3(%arg0: i32, %arg1: i32) -> (i32, i32) {
    %c0_i32 = arith.constant 0 : i32
    %c0_i32_0 = arith.constant 0 : i32
    %c0_i32_1 = arith.constant 0 : i32
    return %c0_i32, %c0_i32_0 : i32, i32
  }
  func.func @transform_4(%arg0: i32, %arg1: i32) -> (i32, i32, i32) {
    %c0_i32 = arith.constant 0 : i32
    %c0_i32_0 = arith.constant 0 : i32
    return %arg0, %c0_i32, %arg1 : i32, i32, i32
  }
  func.func @transform_5(%arg0: i32, %arg1: i32) -> (i32, i32, i32, i32) {
    %c0_i32 = arith.constant 0 : i32
    %c0_i32_0 = arith.constant 0 : i32
    %c0_i32_1 = arith.constant 0 : i32
    return %arg0, %arg1, %c0_i32, %c0_i32_0 : i32, i32, i32, i32
  }
  func.func @transform_6(%arg0: i32, %arg1: i32) -> (i32, i32, i32, i32) {
    %c0_i32 = arith.constant 0 : i32
    %c0_i32_0 = arith.constant 0 : i32
    %c0_i32_1 = arith.constant 0 : i32
    return %arg0, %arg1, %c0_i32, %c0_i32_0 : i32, i32, i32, i32
  }
}

</mosaic_0001>

<bundles_post_ra>
// kernel: tpu_custom_call.1
= control target key start
LH: loop header
LB: loop body
LE: loop exit
PB: predicated region body
PF: predicated region fallthrough
CT: control target
= control target key end

     0   :  { %12 = vsyncpa [#allocation3], 0  ;;  %s2836_s0 = inlined_call_operand.vmem [shape: s32[2,1,1024], index: 0, kind: input, shape index: {}]   ;;  %s2837_s1 = inlined_call_operand.vmem [shape: bf16[2,32,16], index: 1, kind: input, shape index: {}]   ;;  %s2838_s2 = inlined_call_operand.hbm [shape: f32[2,4,3,8,128], index: 2, kind: input, shape index: {}]   ;;  %s2839_s3 = inlined_call_operand.vmem [shape: f32[8,24], index: 3, kind: input, shape index: {}]   ;;  %s2840_s4 = inlined_call_operand.hbm [shape: f32[2,8,512], index: 4, kind: output, shape index: {0}]   ;;  %s2841_s5 = inlined_call_operand.vmem [shape: f32[2,1,8,1], index: 5, kind: output, shape index: {1}]   ;;  %s2842_s6 = inlined_call_operand.vmem [shape: f32[2,1,8,1], index: 6, kind: output, shape index: {2}]  }
   0x1   :  { %14 = vsyncpa [#allocation3 + $0x1], 0 }
   0x2   :  { %15 = vsyncpa [#allocation4], 0 }
   0x3   :  { %17 = vsyncpa [#allocation4 + $0x1], 0  ;;  %s2173_s21 = smov 0   ;;  %s2175_s22 = smov 0  }
   0x4   :  { %s2177_s23 = smov 0   ;;  %s2179_s24 = smov 0  }
   0x5   :  { %s2181_s25 = smov 0   ;;  %s2183_s26 = smov 0  }
   0x6 LB: > { %s1865_s27 = sadd.s32 4294967295, %s2133_s26   ;;  %s1866_s28 = sadd.s32 4294967294, %s2133_s26   ;;  %s2133_s26 = sphi %s2183_s26, %s23_s26   ;;  %s2129_s25 = sphi %s2181_s25, %s2889_s25   ;;  %s2125_s24 = sphi %s2179_s24, %s2888_s24   ;;  %s2121_s23 = sphi %s2177_s23, %s2887_s23   ;;  %s2117_s22 = sphi %s2175_s22, %s2886_s22   ;;  %s2113_s21 = sphi %s2173_s21, %s2885_s21  }
   0x7   : > { %s35_s29 = sadd.s32 1, %s2129_s25  ;;  %s98_s30 = sadd.s32 1, %s2121_s23 }
   0x8   : > { %p37_p0 = scmp.ge.s32.totalorder %s35_s29, 2  ;;  %p105_p1 = scmp.ne.s32.totalorder %s2121_s23, %s2117_s22 }
   0x9   : > { %p106_p2 = scmp.eq.s32.totalorder %s2133_s26, 0  ;;  %p111_p3 = scmp.ne.s32.totalorder %s2117_s22, %s2113_s21 }
   0xa   : > { %s2891_s29 = smov (%p37_p0, %s35_s29), 0  ;;  %p112_p5 = scmp.eq.s32.totalorder %s1865_s27, 0 }
   0xb   : > { %p2214_p4 = por %p106_p2, %p105_p1  ;;  %s93_s8 = ssub.s32 %s2129_s25, %s2891_s29 }
   0xc   : > { %p158_p6 = scmp.eq.s32.totalorder %s1865_s27, 1  ;;  %p96_p7 = scmp.eq.s32.totalorder %s93_s8, 0 }
   0xd   : > { %p2220_p8 = por %p112_p5, %p111_p3  ;;  %p164_p10 = scmp.eq.s32.totalorder %s1866_s28, 1 }
   0xe   : > { %p2224_p9 = por %p158_p6, %p105_p1  ;;  %p1868_p12 = scmp.ge.s32.totalorder %s2133_s26, 2 }
   0xf   : > { %s2229_s11 = scalar_select %p96_p7, %s2121_s23, %s98_s30  }
  0x10   : > { %p2231_p11 = por %p164_p10, %p111_p3  ;;  %p1968_p13 = scmp.lt.s32.totalorder %s2133_s26, 2 }
  0x11   : > { %s263_s13 = sand.u32 1, %s2121_s23   ;;  %s1954_s15 = smul.u32 96, %s2129_s25 }
  0x12   : > { %s1953_s14 = smul.u32 96, %s263_s13  ;;  %p1961_p0 = pnand %p1968_p13, %p2214_p4 }
  0x13   : > { %s275_s18 = scalar_lea.hbm %s2838_s2, %s1954_s15  ;;  %p1870_p1 = scmp.ge.s32.totalorder %s2133_s26, 1 }
  0x14   : > { %s267_s19 = scalar_lea.vmem [#allocation2], %s1953_s14  ;;  %s276_s27 = sshll.u32 %s275_s18, 4  ;;  %s277_s27 = int_to_ptr.hbm [resolvable:$true] %s276_s27 }
  0x15   : > { %s278_s20 = sshll.u32 %s267_s19, 4  ;;  %s264_s28 = scalar_lea.sflag [#allocation3], %s263_s13  ;;  %s279_s20 = int_to_ptr.vmem [resolvable:$true] %s278_s20 }
  0x16   : > { %s2135_s30 = smov 128   ;;  %s2136_s8 = smov 8  }
  0x17   : > { %1963 = dma.hbm_to_vmem [thread:$0]  (!%p1961_p0), %s277_s27, 1536, %s279_s20, %s264_s28, %s2135_s30, %s2135_s30, %s2136_s8  }
  0x18   : > { %p286_p2 = scmp.lt.s32.totalorder %s2133_s26, 3 }
  0x1a   : > { %p287_p3 = pnand %p1870_p1, %p286_p2 }
  0x1b   : > { %s2247_s7 = sand.u32 (!%p287_p3), 1, %s2117_s22  }
  0x1c   : > { %290 = sbr.rel (%p287_p3) target bundleno = 550 (0x226), region = 36  ;;  %s293_s14 = scalar_lea.sflag (!%p287_p3), [#allocation3], %s2247_s7 }
  0x1d   : > { %s1955_s15 = smul.u32 (!%p287_p3), 96, %s2247_s7 }
  0x1f   : > { %s2251_s16 = scalar_lea.vmem (!%p287_p3), [#allocation2], %s1955_s15 }
  0x21   : > { %2104 = dma.done.wait (%p2220_p8), %s293_s14, 1536  }
  0x22   : > { %2106 = vsyncadd (%p2220_p8), %s293_s14, 4294965760  ;;  %p353_p4 = scmp.lt.s32.totalorder %s2125_s24, 1  ;;  %v385_v0 = vlaneseq  ;;  %v2137_v15 = vmov 1.0|1.0   ;;  %vm466_vm10 = vcmask 130048   ;;  %v2325_v21 = vld [vmem:[%s2251_s16] sm:$0xff] }
  0x23   : > { %v2328_v22 = vld [vmem:[%s2251_s16 + $0x8] sm:$0xff]  ;;  %v2331_v23 = vld [vmem:[%s2251_s16 + $0x10] sm:$0xff]  ;;  %v630_v24 = vperm.slane %v2325_v21, 0  ;;  %v2335_v25 = vld [vmem:[%s2251_s16 + $0x18] sm:$0xff]  ;;  %v639_v28 = vperm.slane %v2325_v21, 1  ;;  %v648_v33 = vperm.slane %v2325_v21, 2 }
  0x24   : > { %s354_s13 = scalar_select %p353_p4, %s2125_s24, 1  ;;  %v386_v1 = vshrl.u32 %v385_v0, 7  ;;  %v633_v26 = vperm.slane %v2328_v22, 0  ;;  %v636_v27 = vperm.slane %v2331_v23, 0  ;;  %v642_v29 = vperm.slane %v2328_v22, 1  ;;  %v2342_v30 = vld [vmem:[%s2251_s16 + $0x20] sm:$0xff] }
  0x25   : > { %v2345_v31 = vld [vmem:[%s2251_s16 + $0x28] sm:$0xff]  ;;  %v645_v32 = vperm.slane %v2331_v23, 1  ;;  %v651_v34 = vperm.slane %v2328_v22, 2  ;;  %v654_v35 = vperm.slane %v2331_v23, 2  ;;  %v657_v36 = vperm.slane %v2325_v21, 3  ;;  %v2359_v43 = vld [vmem:[%s2251_s16 + $0x30] sm:$0xff] }
  0x26   : > { %s2259_s17 = sshll.u32 %s354_s13, 3  ;;  %s1949_s27 = sshll.u32 %s354_s13, 4  ;;  %v387_v2 = vadd.s32 8, %v386_v1  ;;  %v660_v37 = vperm.slane %v2328_v22, 3  ;;  %v663_v38 = vperm.slane %v2331_v23, 3  ;;  %v708_v39 = vperm.slane %v2335_v25, 0 }
  0x27   : > { %s356_s20 = scalar_lea.vmem %s2836_s0, %s2259_s17  ;;  %s2268_s9 = scalar_lea.vmem %s2837_s1, %s1949_s27  ;;  %v711_v40 = vperm.slane %v2342_v30, 0  ;;  %v714_v41 = vperm.slane %v2345_v31, 0  ;;  %v717_v42 = vperm.slane %v2335_v25, 1  ;;  %v2362_v44 = vld [vmem:[%s2251_s16 + $0x38] sm:$0xff]  ;;  %v2365_v45 = vld [vmem:[%s2251_s16 + $0x40] sm:$0xff]  ;;  %v720_v46 = vperm.slane %v2342_v30, 1 }
  0x28   : > { %v384_v3 = vld [vmem:[%s356_s20] sm:$0xff]  ;;  %v1951_v20 = vld [vmem:[%s2268_s9 + $0x8] sm:$0xff]  ;;  %v723_v47 = vperm.slane %v2345_v31, 1  ;;  %v726_v48 = vperm.slane %v2335_v25, 2  ;;  %v729_v49 = vperm.slane %v2342_v30, 2  ;;  %v732_v50 = vperm.slane %v2345_v31, 2 }
  0x29   : > { %v388_v4 = vperm.slane %v384_v3, 0  ;;  %v389_v5 = vperm.slane %v384_v3, 1  ;;  %v390_v6 = vperm.slane %v384_v3, 2  ;;  %v391_v7 = vperm.slane %v384_v3, 3  ;;  %v1950_v12 = vld [vmem:[%s2268_s9] sm:$0xff]  ;;  %v2379_v57 = vld [vmem:[%s2251_s16 + $0x48] sm:$0xff] }
  0x2a   : > { %v394_v8 = vperm.slane %v384_v3, 6  ;;  %v392_v9 = vperm.slane %v384_v3, 4  ;;  %v395_v10 = vperm.slane %v384_v3, 7  ;;  %v393_v11 = vperm.slane %v384_v3, 5  ;;  %v2382_v58 = vld [vmem:[%s2251_s16 + $0x50] sm:$0xff]  ;;  %v2385_v59 = vld [vmem:[%s2251_s16 + $0x58] sm:$0xff] }
  0x2b   : > { %vm396_vm0 = vcmp.eq.s32.totalorder %v388_v4, %v386_v1  ;;  %vm404_vm1 = vcmp.eq.s32.totalorder %v388_v4, %v387_v2  ;;  %vm397_vm2 = vcmp.eq.s32.totalorder %v389_v5, %v386_v1  ;;  %vm405_vm3 = vcmp.eq.s32.totalorder %v389_v5, %v387_v2  ;;  %s1871_s14 = sshll.u32 %s2247_s7, 5  ;;  %s1952_s13 = sshll.u32 %s2125_s24, 5 }
  0x2c   : > { %vm1901_vm4 = vmpackc.low %vm404_vm1, %vm396_vm0  ;;  %vm398_vm5 = vcmp.eq.s32.totalorder %v390_v6, %v386_v1  ;;  %vm406_vm6 = vcmp.eq.s32.totalorder %v390_v6, %v387_v2  ;;  %vm2271_vm7 = vcmp.eq.s32.totalorder %v391_v7, %v386_v1  ;;  %vm2275_vm8 = vcmp.eq.s32.totalorder %v391_v7, %v387_v2  ;;  %s2783_s16 = scalar_lea.vmem [#allocation5], %s1871_s14  ;;  %s1678_s20 = scalar_lea.hbm %s2840_s4, %s1952_s13 }
  0x2d   : > { %1902 = vmatpush.bf16.msk.msra.mxu0 %vm1901_vm4, %v2137_v15  ;;  %vm1905_vm9 = vmpackc.low %vm405_vm3, %vm397_vm2  ;;  %vm2279_vm11 = vcmp.eq.s32.totalorder %v394_v8, %v386_v1  ;;  %vm2283_vm12 = vcmp.eq.s32.totalorder %v394_v8, %v387_v2  ;;  %vm2287_vm14 = vcmp.eq.s32.totalorder %v392_v9, %v386_v1  ;;  %vm408_vm15 = vcmp.eq.s32.totalorder %v392_v9, %v387_v2  ;;  %s1680_s27 = sshll.u32 %s2783_s16, 4  ;;  %s1682_s28 = sshll.u32 %s1678_s20, 4  ;;  %s1681_s27 = int_to_ptr.vmem [resolvable:$true] %s1680_s27  ;;  %s1683_s28 = int_to_ptr.hbm [resolvable:$true] %s1682_s28 }
  0x2e   : > { %1906 = vmatpush.bf16.msk.msra.mxu1 %vm1905_vm9, %v2137_v15  ;;  %vm1909_vm13 = vmpackc.low %vm406_vm6, %vm398_vm5  ;;  %vm2295_vm1 = vcmp.eq.s32.totalorder %v395_v10, %v386_v1  ;;  %vm411_vm2 = vcmp.eq.s32.totalorder %v395_v10, %v387_v2  ;;  %vm401_vm4 = vcmp.eq.s32.totalorder %v393_v11, %v386_v1  ;;  %vm409_vm5 = vcmp.eq.s32.totalorder %v393_v11, %v387_v2  ;;  %s1651_s30 = scalar_lea.sflag [#allocation4], %s2247_s7  ;;  %s2065_s9 = sshra.s32 %s1683_s28, 4  ;;  %s2066_s9 = int_to_ptr.hbm [resolvable:$true] %s2065_s9 }
  0x2f   : > { %1910 = vmatpush.bf16.msk.msra.mxu2 %vm1909_vm13, %v2137_v15  ;;  %vm1913_vm0 = vmpackc.low %vm2275_vm8, %vm2271_vm7  ;;  %v735_v51 = vperm.slane %v2335_v25, 3  ;;  %v738_v52 = vperm.slane %v2342_v30, 3  ;;  %v741_v53 = vperm.slane %v2345_v31, 3  ;;  %v786_v54 = vperm.slane %v2359_v43, 0  ;;  %s2067_s8 = scalar_lea.hbm %s2066_s9, 32  ;;  %s2071_s14 = scalar_lea.hbm %s2840_s4, 64 }
  0x30   : > { %1914 = vmatpush.bf16.msk.msra.mxu3 %vm1913_vm0, %v2137_v15  ;;  %1903 = vmatmul.msk.bf16.vlgmr.msra.gmra.mxu0 %vm466_vm10, %v1950_v12  ;;  %vm1925_vm3 = vmpackc.low %vm2283_vm12, %vm2279_vm11  ;;  %v789_v55 = vperm.slane %v2362_v44, 0  ;;  %v792_v56 = vperm.slane %v2365_v45, 0  ;;  %v795_v61 = vperm.slane %v2359_v43, 1  ;;  %v798_v62 = vperm.slane %v2362_v44, 1  ;;  %p2068_p5 = scmp.ne.s32.totalorder %s2066_s9, %s2067_s8  ;;  %p2072_p8 = scmp.lt.s32.totalorder %s2066_s9, %s2840_s4 }
  0x31   : > { %1907 = vmatmul.msk.bf16.vlgmr.msra.gmra.mxu1 %vm466_vm10, %v1950_v12  ;;  %vm1917_vm6 = vmpackc.low %vm408_vm15, %vm2287_vm14  ;;  %v801_v63 = vperm.slane %v2365_v45, 1  ;;  %v804_v0 = vperm.slane %v2359_v43, 2  ;;  %v807_v2 = vperm.slane %v2362_v44, 2  ;;  %v810_v3 = vperm.slane %v2365_v45, 2  ;;  %p2073_p10 = scmp.lt.s32.totalorder %s2071_s14, %s2067_s8 }
  0x32   : > { %1911 = vmatmul.msk.bf16.vlgmr.msra.gmra.mxu2 %vm466_vm10, %v1950_v12  ;;  %1918 = vmatpush.bf16.msk.msrb.mxu0 %vm1917_vm6, %v2137_v15  ;;  %vm1929_vm7 = vmpackc.low %vm411_vm2, %vm2295_vm1  ;;  %v813_v4 = vperm.slane %v2359_v43, 3  ;;  %v816_v5 = vperm.slane %v2362_v44, 3  ;;  %v819_v6 = vperm.slane %v2365_v45, 3  ;;  %v864_v7 = vperm.slane %v2379_v57, 0  ;;  %p2069_p6 = pnand %p2068_p5, %p2224_p9 }
  0x33   : > { %1926 = vmatpush.bf16.msk.msrb.mxu2 %vm1925_vm3, %v2137_v15  ;;  %1915 = vmatmul.msk.bf16.vlgmr.msra.gmra.mxu3 %vm466_vm10, %v1950_v12  ;;  %vm1921_vm8 = vmpackc.low %vm409_vm5, %vm401_vm4  ;;  %v873_v16 = vperm.slane %v2379_v57, 1  ;;  %v876_v17 = vperm.slane %v2382_v58, 1  ;;  %vm937_vm9 = vcmask 195584   ;;  %p2074_p13 = por %p2073_p10, %p2072_p8 }
  0x34   : > { %1930 = vmatpush.bf16.msk.msrb.mxu3 %vm1929_vm7, %v2137_v15  ;;  %1922 = vmatpush.bf16.msk.msrb.mxu1 %vm1921_vm8, %v2137_v15  ;;  %p2070_p7 = pneg %p2069_p6 }
  0x36   : > { %p2075_p0 = pnand %p2074_p13, %p2070_p7 }
  0x40   : > { %1904 = vmatmul.msk.bf16.gmra.mxu0 %vm466_vm10, %v1951_v20 }
  0x41   : > { %1908 = vmatmul.msk.bf16.gmra.mxu1 %vm466_vm10, %v1951_v20 }
  0x42   : > { %1912 = vmatmul.msk.bf16.gmra.mxu2 %vm466_vm10, %v1951_v20 }
  0x43   : > { %1916 = vmatmul.msk.bf16.gmra.mxu3 %vm466_vm10, %v1951_v20 }
  0x50   : > { %1919 = vmatmul.msk.bf16.vlgmr.msrb.gmra.mxu0 %vm466_vm10, %v1950_v12 }
  0x51   : > { %1923 = vmatmul.msk.bf16.vlgmr.msrb.gmra.mxu1 %vm466_vm10, %v1950_v12 }
  0x52   : > { %1927 = vmatmul.msk.bf16.vlgmr.msrb.gmra.mxu2 %vm466_vm10, %v1950_v12 }
  0x53   : > { %1931 = vmatmul.msk.bf16.vlgmr.msrb.gmra.mxu3 %vm466_vm10, %v1950_v12 }
  0x60   : > { %1920 = vmatmul.msk.bf16.gmra.mxu0 %vm466_vm10, %v1951_v20 }
  0x61   : > { %1924 = vmatmul.msk.bf16.gmra.mxu1 %vm466_vm10, %v1951_v20 }
  0x62   : > { %1928 = vmatmul.msk.bf16.gmra.mxu2 %vm466_vm10, %v1951_v20 }
  0x63   : > { %1932 = vmatmul.msk.bf16.gmra.mxu3 %vm466_vm10, %v1951_v20 }
  0xad   : > { %v482_v60 = vpop.f32.mrf.mxu0 }
  0xae   : > { %v501_v1 = vpop.f32.mrf.mxu1  ;;  %v631_v10 = vmul.f32 %v630_v24, %v482_v60  ;;  %v634_v11 = vmul.f32 %v633_v26, %v482_v60  ;;  %v637_v14 = vmul.f32 %v636_v27, %v482_v60  ;;  %v894_v24 = vperm.slane %v2382_v58, 3 }
  0xaf   : > { %v640_v12 = vmul.f32 %v639_v28, %v501_v1  ;;  %v643_v13 = vmul.f32 %v642_v29, %v501_v1  ;;  %v646_v15 = vmul.f32 %v645_v32, %v501_v1  ;;  %v666_v27 = vperm.slane %v2325_v21, 4 }
  0xb0   : > { %v669_v32 = vperm.slane %v2328_v22, 4  ;;  %v672_v60 = vperm.slane %v2331_v23, 4 }
  0xb1   : > { %v641_v28 = vadd.f32 %v640_v12, %v631_v10  ;;  %v644_v29 = vadd.f32 %v643_v13, %v634_v11  ;;  %v647_v1 = vadd.f32 %v646_v15, %v637_v14 }
  0xb5   : > { %v520_v19 = vpop.f32.mrf.mxu2  ;;  %v484_v18 = vpop.f32.mrf.mxu0 }
  0xb6   : > { %v649_v26 = vmul.f32 %v648_v33, %v520_v19  ;;  %v652_v10 = vmul.f32 %v651_v34, %v520_v19  ;;  %v655_v11 = vmul.f32 %v654_v35, %v520_v19  ;;  %v539_v12 = vpop.f32.mrf.mxu3  ;;  %v709_v13 = vmul.f32 %v708_v39, %v484_v18  ;;  %v503_v14 = vpop.f32.mrf.mxu1 }
  0xb7   : > { %v658_v15 = vmul.f32 %v657_v36, %v539_v12  ;;  %v661_v9 = vmul.f32 %v660_v37, %v539_v12  ;;  %v664_v33 = vmul.f32 %v663_v38, %v539_v12  ;;  %v712_v34 = vmul.f32 %v711_v40, %v484_v18 }
  0xb8   : > { %v650_v8 = vadd.f32 %v649_v26, %v641_v28  ;;  %v653_v20 = vadd.f32 %v652_v10, %v644_v29  ;;  %v656_v35 = vadd.f32 %v655_v11, %v647_v1  ;;  %v715_v19 = vmul.f32 %v714_v41, %v484_v18 }
  0xb9   : > { %v718_v39 = vmul.f32 %v717_v42, %v503_v14  ;;  %v721_v36 = vmul.f32 %v720_v46, %v503_v14  ;;  %v724_v37 = vmul.f32 %v723_v47, %v503_v14  ;;  %v684_v38 = vperm.slane %v2325_v21, 6 }
  0xba   : > { %v2439_v12 = vadd.f32 %v658_v15, %v650_v8  ;;  %v687_v40 = vperm.slane %v2328_v22, 6  ;;  %v690_v26 = vperm.slane %v2331_v23, 6  ;;  %v693_v28 = vperm.slane %v2325_v21, 7 }
  0xbb   : > { %v2444_v41 = vadd.f32 %v661_v9, %v653_v20  ;;  %v2446_v18 = vadd.f32 %v664_v33, %v656_v35  ;;  %v719_v42 = vadd.f32 %v718_v39, %v709_v13  ;;  %v696_v46 = vperm.slane %v2328_v22, 7 }
  0xbc   : > { %v722_v29 = vadd.f32 %v721_v36, %v712_v34  ;;  %v725_v1 = vadd.f32 %v724_v37, %v715_v19  ;;  %v699_v47 = vperm.slane %v2331_v23, 7  ;;  %v744_v8 = vperm.slane %v2335_v25, 4 }
  0xbd   : > { %v522_v10 = vpop.f32.mrf.mxu2  ;;  %v487_v11 = vpop.f32.mrf.mxu0  ;;  %v747_v14 = vperm.slane %v2342_v30, 4 }
  0xbe   : > { %v727_v13 = vmul.f32 %v726_v48, %v522_v10  ;;  %v730_v33 = vmul.f32 %v729_v49, %v522_v10  ;;  %v733_v34 = vmul.f32 %v732_v50, %v522_v10  ;;  %v541_v35 = vpop.f32.mrf.mxu3  ;;  %v506_v19 = vpop.f32.mrf.mxu1  ;;  %v787_v20 = vmul.f32 %v786_v54, %v487_v11 }
  0xbf   : > { %v736_v36 = vmul.f32 %v735_v51, %v541_v35  ;;  %v739_v37 = vmul.f32 %v738_v52, %v541_v35  ;;  %v790_v48 = vmul.f32 %v789_v55, %v487_v11  ;;  %v793_v50 = vmul.f32 %v792_v56, %v487_v11 }
  0xc0   : > { %v728_v49 = vadd.f32 %v727_v13, %v719_v42  ;;  %v731_v9 = vadd.f32 %v730_v33, %v722_v29  ;;  %v734_v15 = vadd.f32 %v733_v34, %v725_v1  ;;  %v742_v10 = vmul.f32 %v741_v53, %v541_v35 }
  0xc1   : > { %v796_v51 = vmul.f32 %v795_v61, %v506_v19  ;;  %v799_v52 = vmul.f32 %v798_v62, %v506_v19  ;;  %v802_v54 = vmul.f32 %v801_v63, %v506_v19  ;;  %v762_v55 = vperm.slane %v2335_v25, 6 }
  0xc2   : > { %v2480_v39 = vadd.f32 %v736_v36, %v728_v49  ;;  %v765_v42 = vperm.slane %v2342_v30, 6  ;;  %v2484_v56 = vadd.f32 %v739_v37, %v731_v9  ;;  %v2486_v29 = vadd.f32 %v742_v10, %v734_v15 }
  0xc3   : > { %v797_v53 = vadd.f32 %v796_v51, %v787_v20  ;;  %v768_v61 = vperm.slane %v2345_v31, 6  ;;  %v800_v1 = vadd.f32 %v799_v52, %v790_v48  ;;  %v803_v11 = vadd.f32 %v802_v54, %v793_v50  ;;  %v936_v50 = vld [vmem:[%s2839_s3] sm:$0xff] }
  0xc4   : > { %v771_v62 = vperm.slane %v2335_v25, 7  ;;  %v777_v34 = vperm.slane %v2345_v31, 7  ;;  %v822_v35 = vperm.slane %v2359_v43, 4 }
  0xc5   : > { %v525_v13 = vpop.f32.mrf.mxu2  ;;  %v489_v33 = vpop.f32.mrf.mxu0 }
  0xc6   : > { %v805_v20 = vmul.f32 %v804_v0, %v525_v13  ;;  %v808_v19 = vmul.f32 %v807_v2, %v525_v13  ;;  %v811_v36 = vmul.f32 %v810_v3, %v525_v13  ;;  %v544_v37 = vpop.f32.mrf.mxu3  ;;  %v865_v48 = vmul.f32 %v864_v7, %v489_v33  ;;  %v508_v49 = vpop.f32.mrf.mxu1 }
  0xc7   : > { %v814_v10 = vmul.f32 %v813_v4, %v544_v37  ;;  %v817_v0 = vmul.f32 %v816_v5, %v544_v37  ;;  %v820_v2 = vmul.f32 %v819_v6, %v544_v37  ;;  %v2859_v3 = vperm.slane %v2382_v58, 0 }
  0xc8   : > { %v806_v52 = vadd.f32 %v805_v20, %v797_v53  ;;  %v809_v54 = vadd.f32 %v808_v19, %v800_v1  ;;  %v812_v7 = vadd.f32 %v811_v36, %v803_v11  ;;  %v2860_v13 = vperm.slane %v2385_v59, 0 }
  0xc9   : > { %v868_v51 = vmul.f32 %v2859_v3, %v489_v33  ;;  %v874_v15 = vmul.f32 %v873_v16, %v508_v49  ;;  %v877_v4 = vmul.f32 %v876_v17, %v508_v49  ;;  %v2861_v5 = vperm.slane %v2385_v59, 1 }
  0xca   : > { %v871_v63 = vmul.f32 %v2860_v13, %v489_v33  ;;  %v939_v6 = vsel %vm937_vm9, %v936_v50, 0  ;;  %v2528_v33 = vadd.f32 %v814_v10, %v806_v52  ;;  %v2530_v20 = vadd.f32 %v817_v0, %v809_v54 }
  0xcb   : > { %v880_v9 = vmul.f32 %v2861_v5, %v508_v49  ;;  %v2526_v11 = vand.u32 4294901760, %v939_v6  ;;  %v2532_v16 = vadd.f32 %v820_v2, %v812_v7  ;;  %v875_v17 = vadd.f32 %v874_v15, %v865_v48 }
  0xcc   : > { %v878_v19 = vadd.f32 %v877_v4, %v868_v51  ;;  %v2862_v2 = vperm.slane %v2379_v57, 2  ;;  %v2864_v48 = vperm.slane %v2385_v59, 2  ;;  %v2865_v4 = vperm.slane %v2379_v57, 3 }
  0xcd   : > { %v881_v36 = vadd.f32 %v880_v9, %v871_v63  ;;  %v2535_v49 = vsub.f32 %v939_v6, %v2526_v11  ;;  %v527_v3 = vpop.f32.mrf.mxu2  ;;  %v558_v13 = vpop.f32.mrf.mxu0  ;;  %v2863_v63 = vperm.slane %v2382_v58, 2  ;;  %v906_v10 = vperm.slane %v2385_v59, 4 }
  0xce   : > { %v883_v15 = vmul.f32 %v2862_v2, %v527_v3  ;;  %v889_v51 = vmul.f32 %v2864_v48, %v527_v3  ;;  %v546_v52 = vpop.f32.mrf.mxu3  ;;  %v667_v54 = vmul.f32 %v666_v27, %v558_v13  ;;  %v577_v7 = vpop.f32.mrf.mxu1  ;;  %v670_v2 = vmul.f32 %v669_v32, %v558_v13 }
  0xcf   : > { %v886_v9 = vmul.f32 %v2863_v63, %v527_v3  ;;  %v892_v6 = vmul.f32 %v2865_v4, %v546_v52  ;;  %v895_v0 = vmul.f32 %v894_v24, %v546_v52  ;;  %v673_v27 = vmul.f32 %v672_v60, %v558_v13 }
  0xd0   : > { %v884_v63 = vadd.f32 %v883_v15, %v875_v17  ;;  %v890_v5 = vadd.f32 %v889_v51, %v881_v36  ;;  %v668_v3 = vadd.f32 %v667_v54, %v2439_v12  ;;  %v671_v48 = vadd.f32 %v670_v2, %v2444_v41 }
  0xd1   : > { %v887_v1 = vadd.f32 %v886_v9, %v878_v19  ;;  %v2866_v4 = vperm.slane %v2325_v21, 5  ;;  %v2867_v24 = vperm.slane %v2328_v22, 5  ;;  %v2868_v32 = vperm.slane %v2385_v59, 3 }
  0xd2   : > { %v2869_v17 = vperm.slane %v2331_v23, 5  ;;  %v849_v36 = vperm.slane %v2359_v43, 7  ;;  %v852_v12 = vperm.slane %v2362_v44, 7  ;;  %v2571_v41 = vadd.f32 %v892_v6, %v884_v63 }
  0xd3   : > { %v676_v50 = vmul.f32 %v2866_v4, %v577_v7  ;;  %v679_v53 = vmul.f32 %v2867_v24, %v577_v7  ;;  %v898_v37 = vmul.f32 %v2868_v32, %v546_v52  ;;  %v2573_v15 = vadd.f32 %v895_v0, %v887_v1 }
  0xd4   : > { %v682_v19 = vmul.f32 %v2869_v17, %v577_v7  ;;  %v674_v60 = vadd.f32 %v673_v27, %v2446_v18  ;;  %v2577_v13 = vand.u32 4294901760, %v2535_v49  ;;  %v855_v54 = vperm.slane %v2365_v45, 7 }
  0xd5   : > { %v2579_v9 = vadd.f32 %v898_v37, %v890_v5  ;;  %v677_v51 = vadd.f32 %v676_v50, %v668_v3  ;;  %v680_v52 = vadd.f32 %v679_v53, %v671_v48  ;;  %v596_v2 = vpop.f32.mrf.mxu2  ;;  %v560_v4 = vpop.f32.mrf.mxu0  ;;  %v909_v1 = vperm.slane %v2379_v57, 5 }
  0xd6   : > { %v683_v7 = vadd.f32 %v682_v19, %v674_v60  ;;  %v963_v6 = vsub.f32 %v2535_v49, %v2577_v13  ;;  %v912_v0 = vperm.slane %v2382_v58, 5  ;;  %v685_v18 = vmul.f32 %v684_v38, %v596_v2  ;;  %v615_v50 = vpop.f32.mrf.mxu3  ;;  %v579_v63 = vpop.f32.mrf.mxu1 }
  0xd7   : > { %v688_v37 = vmul.f32 %v687_v40, %v596_v2  ;;  %v691_v53 = vmul.f32 %v690_v26, %v596_v2  ;;  %v745_v5 = vmul.f32 %v744_v8, %v560_v4  ;;  %v694_v3 = vmul.f32 %v693_v28, %v615_v50 }
  0xd8   : > { %v697_v48 = vmul.f32 %v696_v46, %v615_v50  ;;  %v700_v38 = vmul.f32 %v699_v47, %v615_v50  ;;  %v748_v40 = vmul.f32 %v747_v14, %v560_v4  ;;  %v686_v27 = vadd.f32 %v685_v18, %v677_v51 }
  0xd9   : > { %v689_v24 = vadd.f32 %v688_v37, %v680_v52  ;;  %v692_v26 = vadd.f32 %v691_v53, %v683_v7  ;;  %v746_v32 = vadd.f32 %v745_v5, %v2480_v39  ;;  %v2870_v17 = vperm.slane %v2345_v31, 4 }
  0xda   : > { %v749_v8 = vadd.f32 %v748_v40, %v2484_v56  ;;  %v2871_v28 = vperm.slane %v2335_v25, 5  ;;  %v915_v46 = vperm.slane %v2385_v59, 5  ;;  %v695_v23 = vadd.f32 %v694_v3, %v686_v27 }
  0xdb   : > { %v751_v21 = vmul.f32 %v2870_v17, %v560_v4  ;;  %v698_v47 = vadd.f32 %v697_v48, %v689_v24  ;;  %v701_v19 = vadd.f32 %v700_v38, %v692_v26  ;;  %v2872_v14 = vperm.slane %v2342_v30, 5 }
  0xdc   : > { %v754_v22 = vmul.f32 %v2871_v28, %v579_v63  ;;  %v2873_v39 = vperm.slane %v2345_v31, 5  ;;  %v918_v56 = vperm.slane %v2379_v57, 6  ;;  %v921_v7 = vperm.slane %v2382_v58, 6 }
  0xdd   : > { %v757_v60 = vmul.f32 %v2872_v14, %v579_v63  ;;  %v752_v51 = vadd.f32 %v751_v21, %v2486_v29  ;;  %v2616_v18 = vand.u32 4294901760, %v701_v19  ;;  %v2618_v37 = vand.u32 4294901760, %v963_v6  ;;  %v598_v50 = vpop.f32.mrf.mxu2  ;;  %v563_v5 = vpop.f32.mrf.mxu0 }
  0xde   : > { %v760_v52 = vmul.f32 %v2873_v39, %v579_v63  ;;  %v755_v2 = vadd.f32 %v754_v22, %v746_v32  ;;  %v2620_v3 = vand.u32 4294901760, %v698_v47  ;;  %v2622_v48 = vand.u32 4294901760, %v695_v23  ;;  %v617_v6 = vpop.f32.mrf.mxu3  ;;  %v582_v27 = vpop.f32.mrf.mxu1 }
  0xdf   : > { %v758_v4 = vadd.f32 %v757_v60, %v749_v8  ;;  %v924_v29 = vperm.slane %v2385_v59, 6  ;;  %v763_v63 = vmul.f32 %v762_v55, %v598_v50  ;;  %v766_v38 = vmul.f32 %v765_v42, %v598_v50  ;;  %955 = vmatpush.msra.mxu0 %v2616_v18  ;;  %1047 = vmatpush.msra.mxu3 %v2616_v18 }
  0xe0   : > { %v761_v53 = vadd.f32 %v760_v52, %v752_v51  ;;  %v769_v40 = vmul.f32 %v768_v61, %v598_v50  ;;  %v927_v24 = vperm.slane %v2379_v57, 7  ;;  %v772_v26 = vmul.f32 %v771_v62, %v617_v6 }
  0xe1   : > { %v778_v55 = vmul.f32 %v777_v34, %v617_v6  ;;  %v823_v42 = vmul.f32 %v822_v35, %v563_v5  ;;  %v930_v32 = vperm.slane %v2382_v58, 7  ;;  %v764_v61 = vadd.f32 %v763_v63, %v755_v2  ;;  %957 = vmatpush.msra.mxu0 %v2620_v3  ;;  %1049 = vmatpush.msra.mxu3 %v2620_v3 }
  0xe2   : > { %v767_v8 = vadd.f32 %v766_v38, %v758_v4  ;;  %v770_v17 = vadd.f32 %v769_v40, %v761_v53  ;;  %v2874_v21 = vperm.slane %v2362_v44, 4  ;;  %v2875_v25 = vperm.slane %v2365_v45, 4 }
  0xe3   : > { %v824_v22 = vadd.f32 %v823_v42, %v2528_v33  ;;  %v983_v31 = vsub.f32 %v701_v19, %v2616_v18  ;;  %v2876_v34 = vperm.slane %v2359_v43, 5  ;;  %v2877_v14 = vperm.slane %v2342_v30, 7  ;;  %959 = vmatpush.msra.mxu0 %v2622_v48  ;;  %1051 = vmatpush.msra.mxu3 %v2622_v48 }
  0xe4   : > { %v826_v28 = vmul.f32 %v2874_v21, %v563_v5  ;;  %v829_v62 = vmul.f32 %v2875_v25, %v563_v5  ;;  %v779_v51 = vadd.f32 %v778_v55, %v770_v17  ;;  %v933_v33 = vperm.slane %v2385_v59, 7  ;;  %965 = vmatmul.f32.vlgmr.msra.gmra.mxu0 %v2618_v37  ;;  %1055 = vmatmul.f32.vlgmr.msra.gmra.mxu3 %v2577_v13 }
  0xe5   : > { %v832_v35 = vmul.f32 %v2876_v34, %v582_v27  ;;  %v775_v60 = vmul.f32 %v2877_v14, %v617_v6  ;;  %v2656_v52 = vadd.f32 %v772_v26, %v764_v61  ;;  %1020 = vmatpush.msra.mxu2 %v983_v31  ;;  %v2878_v19 = vperm.slane %v2362_v44, 5  ;;  %v601_v6 = vpop.f32.mrf.mxu2  ;;  %v565_v55 = vpop.f32.mrf.mxu0 }
  0xe6   : > { %v827_v39 = vadd.f32 %v826_v28, %v2530_v20  ;;  %v830_v2 = vadd.f32 %v829_v62, %v2532_v16  ;;  %v2879_v53 = vperm.slane %v2365_v45, 5  ;;  %v989_v5 = vsub.f32 %v698_v47, %v2620_v3  ;;  %v620_v21 = vpop.f32.mrf.mxu3 }
  0xe7   : > { %v835_v4 = vmul.f32 %v2878_v19, %v582_v27  ;;  %v776_v30 = vadd.f32 %v775_v60, %v767_v8  ;;  %v984_v20 = vand.u32 4294901760, %v983_v31  ;;  %v995_v63 = vsub.f32 %v695_v23, %v2622_v48  ;;  %v584_v19 = vpop.f32.mrf.mxu1 }
  0xe8   : > { %v838_v50 = vmul.f32 %v2879_v53, %v582_v27  ;;  %v833_v38 = vadd.f32 %v832_v35, %v824_v22  ;;  %v2667_v26 = vand.u32 4294901760, %v779_v51  ;;  %1023 = vmatpush.msra.mxu2 %v989_v5  ;;  %v2880_v47 = vperm.slane %v2359_v43, 6 }
  0xe9   : > { %v836_v40 = vadd.f32 %v835_v4, %v827_v39  ;;  %1075 = vmatpush.msrb.mxu0 %v984_v20  ;;  %v2881_v42 = vperm.slane %v2362_v44, 6  ;;  %v2882_v8 = vperm.slane %v2365_v45, 6  ;;  %v990_v17 = vand.u32 4294901760, %v989_v5 }
  0xea   : > { %v839_v16 = vadd.f32 %v838_v50, %v830_v2  ;;  %v841_v27 = vmul.f32 %v2880_v47, %v601_v6  ;;  %v985_v28 = vsub.f32 %v983_v31, %v984_v20  ;;  %v2883_v22 = vperm.slane %v2379_v57, 4  ;;  %1026 = vmatpush.msra.mxu2 %v995_v63 }
  0xeb   : > { %v844_v61 = vmul.f32 %v2881_v42, %v601_v6  ;;  %v847_v23 = vmul.f32 %v2882_v8, %v601_v6  ;;  %v2884_v62 = vperm.slane %v2382_v58, 4  ;;  %v907_v35 = vmul.f32 %v906_v10, %v565_v55  ;;  %1079 = vmatpush.msrb.mxu0 %v990_v17  ;;  %1029 = vmatmul.f32.vlgmr.msra.gmra.mxu2 %v2535_v49 }
  0xec   : > { %v901_v25 = vmul.f32 %v2883_v22, %v565_v55  ;;  %v842_v14 = vadd.f32 %v841_v27, %v833_v38  ;;  %v996_v39 = vand.u32 4294901760, %v995_v63  ;;  %v2682_v2 = vand.u32 4294901760, %v776_v30  ;;  %1127 = vmatpush.msrb.mxu2 %v2667_v26 }
  0xed   : > { %v904_v34 = vmul.f32 %v2884_v62, %v565_v55  ;;  %v848_v60 = vadd.f32 %v847_v23, %v839_v16  ;;  %v845_v4 = vadd.f32 %v844_v61, %v836_v40  ;;  %v986_v31 = vand.u32 4294901760, %v985_v28  ;;  %v603_v55 = vpop.f32.mrf.mxu2 }
  0xee   : > { %v908_v50 = vadd.f32 %v907_v35, %v2579_v9  ;;  %v850_v10 = vmul.f32 %v849_v36, %v620_v21  ;;  %v853_v20 = vmul.f32 %v852_v12, %v620_v21  ;;  %v856_v38 = vmul.f32 %v855_v54, %v620_v21  ;;  %1083 = vmatpush.msrb.mxu0 %v996_v39  ;;  %v622_v27 = vpop.f32.mrf.mxu3 }
  0xef   : > { %v905_v53 = vadd.f32 %v904_v34, %v2573_v15  ;;  %v2695_v40 = vand.u32 4294901760, %v2656_v52  ;;  %987 = vmatpush.msra.mxu1 %v986_v31  ;;  %v902_v15 = vadd.f32 %v901_v25, %v2571_v41  ;;  %v991_v16 = vsub.f32 %v989_v5, %v990_v17  ;;  %1129 = vmatpush.msrb.mxu2 %v2682_v2 }
  0xf0   : > { %v1155_v9 = vsub.f32 %v779_v51, %v2667_v26  ;;  %v913_v43 = vmul.f32 %v912_v0, %v584_v19  ;;  %v851_v36 = vadd.f32 %v850_v10, %v842_v14  ;;  %v857_v6 = vadd.f32 %v856_v38, %v848_v60  ;;  %1085 = vmatmul.f32.vlgmr.msrb.gmra.mxu0 %v2526_v11 }
  0xf1   : > { %v910_v44 = vmul.f32 %v909_v1, %v584_v19  ;;  %v916_v45 = vmul.f32 %v915_v46, %v584_v19  ;;  %v854_v12 = vadd.f32 %v853_v20, %v845_v4  ;;  %v992_v54 = vand.u32 4294901760, %v991_v16  ;;  %1131 = vmatpush.msrb.mxu2 %v2695_v40 }
  0xf2   : > { %1192 = vmatpush.msra.mxu0 %v1155_v9  ;;  %v914_v41 = vadd.f32 %v913_v43, %v905_v53  ;;  %v997_v5 = vsub.f32 %v995_v63, %v996_v39  ;;  %v1161_v0 = vsub.f32 %v776_v30, %v2682_v2  ;;  %v1156_v47 = vand.u32 4294901760, %v1155_v9 }
  0xf3   : > { %v917_v51 = vadd.f32 %v916_v45, %v908_v50  ;;  %v1167_v1 = vsub.f32 %v2656_v52, %v2695_v40  ;;  %993 = vmatpush.msra.mxu1 %v992_v54  ;;  %v919_v42 = vmul.f32 %v918_v56, %v603_v55  ;;  %v922_v63 = vmul.f32 %v921_v7, %v603_v55 }
  0xf4   : > { %v998_v46 = vand.u32 4294901760, %v997_v5  ;;  %v925_v61 = vmul.f32 %v924_v29, %v603_v55  ;;  %v911_v8 = vadd.f32 %v910_v44, %v902_v15  ;;  %1195 = vmatpush.msra.mxu0 %v1161_v0  ;;  %1247 = vmatpush.msra.mxu2 %v1156_v47  ;;  %v1162_v30 = vand.u32 4294901760, %v1161_v0 }
  0xf5   : > { %v1157_v23 = vsub.f32 %v1155_v9, %v1156_v47  ;;  %v2717_v17 = vand.u32 4294901760, %v857_v6  ;;  %v923_v52 = vadd.f32 %v922_v63, %v914_v41  ;;  %1137 = vmatmul.f32.vlgmr.msrb.gmra.mxu2 %v2618_v37  ;;  %v928_v56 = vmul.f32 %v927_v24, %v622_v27 }
  0xf6   : > { %999 = vmatpush.msra.mxu1 %v998_v46  ;;  %v926_v21 = vadd.f32 %v925_v61, %v917_v51  ;;  %v1168_v28 = vand.u32 4294901760, %v1167_v1  ;;  %1198 = vmatpush.msra.mxu0 %v1167_v1  ;;  %v931_v29 = vmul.f32 %v930_v32, %v622_v27  ;;  %v934_v22 = vmul.f32 %v933_v33, %v622_v27 }
  0xf7   : > { %1001 = vmatmul.f32.vlgmr.msra.gmra.mxu1 %v2526_v11  ;;  %v1158_v7 = vand.u32 4294901760, %v1157_v23  ;;  %v1163_v25 = vsub.f32 %v1161_v0, %v1162_v30  ;;  %v920_v62 = vadd.f32 %v919_v42, %v911_v8  ;;  %1251 = vmatpush.msra.mxu2 %v1162_v30  ;;  %v2728_v34 = vand.u32 4294901760, %v854_v12 }
  0xf8   : > { %1103 = vmatpush.msrb.mxu1 %v2616_v18  ;;  %v1327_v57 = vsub.f32 %v857_v6, %v2717_v17  ;;  %v1169_v24 = vsub.f32 %v1167_v1, %v1168_v28  ;;  %1299 = vmatpush.msrb.mxu0 %v2717_v17  ;;  %v935_v35 = vadd.f32 %v934_v22, %v926_v21  ;;  %v2732_v58 = vand.u32 4294901760, %v851_v36 }
  0xf9   : > { %1159 = vmatpush.msrb.mxu3 %v1158_v7  ;;  %v1164_v14 = vand.u32 4294901760, %v1163_v25  ;;  %v932_v59 = vadd.f32 %v931_v29, %v923_v52  ;;  %1255 = vmatpush.msra.mxu2 %v1168_v28  ;;  %v1333_v18 = vsub.f32 %v854_v12, %v2728_v34  ;;  %v929_v19 = vadd.f32 %v928_v56, %v920_v62 }
  0xfa   : > { %1105 = vmatpush.msrb.mxu1 %v2620_v3  ;;  %v1328_v32 = vand.u32 4294901760, %v1327_v57  ;;  %1301 = vmatpush.msrb.mxu0 %v2728_v34  ;;  %v1170_v33 = vand.u32 4294901760, %v1169_v24  ;;  %v1339_v60 = vsub.f32 %v851_v36, %v2732_v58  ;;  %v2738_v39 = vand.u32 4294901760, %v935_v35 }
  0xfb   : > { %1165 = vmatpush.msrb.mxu3 %v1164_v14  ;;  %1364 = vmatpush.msrb.mxu2 %v1327_v57  ;;  %v1334_v4 = vand.u32 4294901760, %v1333_v18  ;;  %v2743_v53 = vand.u32 4294901760, %v932_v59  ;;  %v1474_v20 = vand.u32 4294901760, %v929_v19 }
  0xfc   : > { %1107 = vmatpush.msrb.mxu1 %v2622_v48  ;;  %v1329_v31 = vsub.f32 %v1327_v57, %v1328_v32  ;;  %1303 = vmatpush.msrb.mxu0 %v2732_v58  ;;  %v1340_v3 = vand.u32 4294901760, %v1339_v60  ;;  %v1499_v50 = vsub.f32 %v935_v35, %v2738_v39 }
  0xfd   : > { %1171 = vmatpush.msrb.mxu3 %v1170_v33  ;;  %1367 = vmatpush.msrb.mxu2 %v1333_v18  ;;  %v1335_v10 = vsub.f32 %v1333_v18, %v1334_v4  ;;  %v1505_v15 = vsub.f32 %v932_v59, %v2743_v53  ;;  %v1511_v43 = vsub.f32 %v929_v19, %v1474_v20 }
  0xfe   : > { %1219 = vmatpush.msra.mxu1 %v2667_v26  ;;  %1173 = vmatmul.f32.vlgmr.msrb.gmra.mxu3 %v2526_v11  ;;  %v1330_v48 = vand.u32 4294901760, %v1329_v31  ;;  %v1341_v38 = vsub.f32 %v1339_v60, %v1340_v3  ;;  %v1500_v16 = vand.u32 4294901760, %v1499_v50 }
  0xff   : > { %1109 = vmatmul.f32.vlgmr.msrb.gmra.mxu1 %v2526_v11  ;;  %1201 = vmatmul.f32.vlgmr.msra.gmra.mxu0 %v2535_v49  ;;  %v1336_v9 = vand.u32 4294901760, %v1335_v10  ;;  %v1506_v6 = vand.u32 4294901760, %v1505_v15 }
 0x100   : > { %1221 = vmatpush.msra.mxu1 %v2682_v2  ;;  %1275 = vmatpush.msra.mxu3 %v2667_v26  ;;  %v1342_v26 = vand.u32 4294901760, %v1341_v38  ;;  %v1501_v36 = vsub.f32 %v1499_v50, %v1500_v16 }
 0x101   : > { %1419 = vmatpush.msra.mxu0 %v1328_v32  ;;  %1370 = vmatpush.msrb.mxu2 %v1339_v60  ;;  %v1507_v44 = vsub.f32 %v1505_v15, %v1506_v6 }
 0x102   : > { %1223 = vmatpush.msra.mxu1 %v2695_v40  ;;  %1257 = vmatmul.f32.vlgmr.msra.gmra.mxu2 %v2526_v11 }
 0x103   : > { %1277 = vmatpush.msra.mxu3 %v2682_v2  ;;  %1423 = vmatpush.msra.mxu0 %v1334_v4  ;;  %v1512_v2 = vand.u32 4294901760, %v1511_v43  ;;  %v1508_v12 = vand.u32 4294901760, %v1507_v44 }
 0x104   : > { %1331 = vmatpush.msrb.mxu1 %v1330_v48  ;;  %1471 = vmatpush.msra.mxu2 %v2738_v39 }
 0x105   : > { %1279 = vmatpush.msra.mxu3 %v2695_v40  ;;  %1427 = vmatpush.msra.mxu0 %v1340_v3  ;;  %v1502_v40 = vand.u32 4294901760, %v1501_v36  ;;  %v1513_v45 = vsub.f32 %v1511_v43, %v1512_v2 }
 0x106   : > { %1337 = vmatpush.msrb.mxu1 %v1336_v9  ;;  %1473 = vmatpush.msra.mxu2 %v2743_v53 }
 0x107   : > { %1391 = vmatpush.msrb.mxu3 %v2717_v17  ;;  %1227 = vmatmul.f32.vlgmr.msra.gmra.mxu1 %v2577_v13  ;;  %v1514_v54 = vand.u32 4294901760, %v1513_v45 }
 0x108   : > { %1343 = vmatpush.msrb.mxu1 %v1342_v26  ;;  %1281 = vmatmul.f32.vlgmr.msra.gmra.mxu3 %v2526_v11 }
 0x109   : > { %1393 = vmatpush.msrb.mxu3 %v2728_v34  ;;  %1475 = vmatpush.msra.mxu2 %v1474_v20 }
 0x10a   : > { %1309 = vmatmul.f32.vlgmr.msrb.gmra.mxu0 %v2618_v37  ;;  %1447 = vmatpush.msra.mxu1 %v2717_v17 }
 0x10b   : > { %1536 = vmatpush.msrb.mxu0 %v1499_v50  ;;  %1395 = vmatpush.msrb.mxu3 %v2732_v58 }
 0x10c   : > { %1373 = vmatmul.f32.vlgmr.msrb.gmra.mxu2 %v2535_v49  ;;  %1449 = vmatpush.msra.mxu1 %v2728_v34 }
 0x10d   : > { %1539 = vmatpush.msrb.mxu0 %v1505_v15  ;;  %1591 = vmatpush.msrb.mxu2 %v1500_v16 }
 0x10e   : > { %1503 = vmatpush.msra.mxu3 %v1502_v40  ;;  %1451 = vmatpush.msra.mxu1 %v2732_v58 }
 0x10f   : > { %1542 = vmatpush.msrb.mxu0 %v1511_v43  ;;  %1595 = vmatpush.msrb.mxu2 %v1506_v6 }
 0x110   : > { %1509 = vmatpush.msra.mxu3 %v1508_v12  ;;  %1345 = vmatmul.f32.vlgmr.msrb.gmra.mxu1 %v2526_v11 }
 0x111   : > { %1399 = vmatmul.f32.vlgmr.msrb.gmra.mxu3 %v2577_v13  ;;  %1599 = vmatpush.msrb.mxu2 %v1512_v2 }
 0x112   : > { %1515 = vmatpush.msra.mxu3 %v1514_v54  ;;  %1563 = vmatpush.msrb.mxu1 %v2738_v39 }
 0x113   : > { %1429 = vmatmul.f32.vlgmr.msra.gmra.mxu0 %v2526_v11 }
 0x114   : > { %1619 = vmatpush.msrb.mxu3 %v2738_v39  ;;  %1481 = vmatmul.f32.vlgmr.msra.gmra.mxu2 %v2618_v37 }
 0x115   : > { %1565 = vmatpush.msrb.mxu1 %v2743_v53 }
 0x116   : > { %1621 = vmatpush.msrb.mxu3 %v2743_v53 }
 0x117   : > { %1567 = vmatpush.msrb.mxu1 %v1474_v20 }
 0x118   : > { %1623 = vmatpush.msrb.mxu3 %v1474_v20  ;;  %1453 = vmatmul.f32.vlgmr.msra.gmra.mxu1 %v2526_v11 }
 0x119   : > { %1517 = vmatmul.f32.vlgmr.msra.gmra.mxu3 %v2526_v11 }
 0x11b   : > { %1545 = vmatmul.f32.vlgmr.msrb.gmra.mxu0 %v2535_v49 }
 0x11c   : > { %1601 = vmatmul.f32.vlgmr.msrb.gmra.mxu2 %v2526_v11 }
 0x120   : > { %1571 = vmatmul.f32.vlgmr.msrb.gmra.mxu1 %v2577_v13 }
 0x121   : > { %1625 = vmatmul.f32.vlgmr.msrb.gmra.mxu3 %v2526_v11 }
 0x161   : > { %v966_v37 = vpop.f32.mrf.mxu0 }
 0x167   : > { %v1056_v51 = vpop.f32.mrf.mxu3 }
 0x16d   : > { %v1086_v0 = vpop.f32.mrf.mxu0 }
 0x16e   : > { %v1030_v41 = vpop.f32.mrf.mxu2 }
 0x174   : > { %v1002_v5 = vpop.f32.mrf.mxu1 }
 0x175   : > { %v1003_v55 = vadd.f32 %v1002_v5, %v966_v37 }
 0x177   : > { %v1031_v47 = vadd.f32 %v1030_v41, %v1003_v55 }
 0x178   : > { %v1138_v46 = vpop.f32.mrf.mxu2 }
 0x179   : > { %v1057_v1 = vadd.f32 %v1056_v51, %v1031_v47 }
 0x17b   : > { %v1087_v27 = vadd.f32 %v1086_v0, %v1057_v1 }
 0x17c   : > { %v1110_v42 = vpop.f32.mrf.mxu1  ;;  %v1202_v61 = vpop.f32.mrf.mxu0 }
 0x17d   : > { %v1111_v63 = vadd.f32 %v1110_v42, %v1087_v27 }
 0x17f   : > { %1629 = vst [vmem:[%s2783_s16] sm:$0xff] %v1111_v63 }
 0x181   : > { %v1174_v11 = vpop.f32.mrf.mxu3 }
 0x182   : > { %v1175_v49 = vadd.f32 %v1174_v11, %v1138_v46 }
 0x184   : > { %v1203_v13 = vadd.f32 %v1202_v61, %v1175_v49  ;;  %v1228_v30 = vpop.f32.mrf.mxu1 }
 0x185   : > { %v1258_v8 = vpop.f32.mrf.mxu2 }
 0x186   : > { %v1229_v23 = vadd.f32 %v1228_v30, %v1203_v13 }
 0x187   : > { %v1310_v17 = vpop.f32.mrf.mxu0 }
 0x188   : > { %v1259_v52 = vadd.f32 %v1258_v8, %v1229_v23 }
 0x18b   : > { %v1282_v21 = vpop.f32.mrf.mxu3 }
 0x18c   : > { %v1283_v56 = vadd.f32 %v1282_v21, %v1259_v52 }
 0x18d   : > { %v1346_v7 = vpop.f32.mrf.mxu1 }
 0x18e   : > { %1630 = vst [vmem:[%s2783_s16 + $0x8] sm:$0xff] %v1283_v56  ;;  %v1347_v29 = vadd.f32 %v1346_v7, %v1310_v17  ;;  %v1633_v4 = vadd.f32 %v1283_v56, %v1111_v63  ;;  %v1641_v50 = vmul.f32 %v1283_v56, %v1283_v56 }
 0x18f   : > { %v1374_v28 = vpop.f32.mrf.mxu2 }
 0x190   : > { %v1430_v22 = vpop.f32.mrf.mxu0  ;;  %v1375_v25 = vadd.f32 %v1374_v28, %v1347_v29 }
 0x194   : > { %v1400_v62 = vpop.f32.mrf.mxu3 }
 0x195   : > { %v1401_v34 = vadd.f32 %v1400_v62, %v1375_v25  ;;  %v1454_v35 = vpop.f32.mrf.mxu1 }
 0x197   : > { %v1431_v57 = vadd.f32 %v1430_v22, %v1401_v34  ;;  %v1482_v24 = vpop.f32.mrf.mxu2 }
 0x198   : > { %v1546_v59 = vpop.f32.mrf.mxu0 }
 0x199   : > { %v1455_v14 = vadd.f32 %v1454_v35, %v1431_v57 }
 0x19b   : > { %1631 = vst [vmem:[%s2783_s16 + $0x10] sm:$0xff] %v1455_v14  ;;  %v1634_v53 = vadd.f32 %v1633_v4, %v1455_v14 }
 0x19c   : > { %v1518_v58 = vpop.f32.mrf.mxu3 }
 0x19d   : > { %v1519_v18 = vadd.f32 %v1518_v58, %v1482_v24  ;;  %v1572_v33 = vpop.f32.mrf.mxu1 }
 0x19f   : > { %v1547_v32 = vadd.f32 %v1546_v59, %v1519_v18  ;;  %v1602_v60 = vpop.f32.mrf.mxu2 }
 0x1a1   : > { %v1573_v39 = vadd.f32 %v1572_v33, %v1547_v32 }
 0x1a3   : > { %v1603_v19 = vadd.f32 %v1602_v60, %v1573_v39 }
 0x1a4   : > { %v1626_v31 = vpop.f32.mrf.mxu3 }
 0x1a5   : > { %v1627_v3 = vadd.f32 %v1626_v31, %v1603_v19 }
 0x1a7   : > { %1632 = vst [vmem:[%s2783_s16 + $0x18] sm:$0xff] %v1627_v3  ;;  %v1635_v48 = vadd.f32 %v1634_v53, %v1627_v3 }
 0x1a8   : > { %2078 = shalt.err (!%p2075_p0)
}
 0x1a9   : > { %1958 = dma.vmem_to_hbm [thread:$0]  (%p2224_p9), %s1681_s27, 512, %s1683_s28, %s1651_s30   ;;  %v1640_v10 = vmul.f32 %v1111_v63, %v1111_v63  ;;  %v1642_v20 = vmul.f32 %v1455_v14, %v1455_v14  ;;  %1636 = vadd.xlane.f32.xlu0 %v1635_v48  ;;  %v1643_v38 = vmul.f32 %v1627_v3, %v1627_v3  ;;  %vm1638_vm10 = vcmask 7168  }
 0x1aa   : > { %s375_s19 = scalar_lea.vmem %s2841_s5, %s2259_s17  ;;  %s382_s9 = scalar_lea.vmem %s2842_s6, %s2259_s17 }
 0x1ab   : > { %v1644_v15 = vadd.f32 %v1641_v50, %v1640_v10 }
 0x1ad   : > { %v1645_v16 = vadd.f32 %v1644_v15, %v1642_v20 }
 0x1af   : > { %v1646_v9 = vadd.f32 %v1645_v16, %v1643_v38 }
 0x1b1   : > { %1647 = vadd.xlane.f32.xlu0 %v1646_v9 }
 0x21c   : > { %v1637_v43 = vpop.xlane.xlu0 %1636 }
 0x21d   : > { %1639 = vst.msk [vmem:[%s375_s19] sm:$0xff] %vm1638_vm10, %v1637_v43 }
 0x224   : > { %v1648_v26 = vpop.xlane.xlu0 %1647 }
 0x225   : > { %1649 = vst.msk [vmem:[%s382_s9] sm:$0xff] %vm1638_vm10, %v1648_v26 }
 0x226 PF: > { %s1700_s27 = sand.u32 1, %s2113_s21   ;;  %p1965_p9 = pnand %p1868_p12, %p2231_p11 }
 0x227   : > { %s1701_s28 = scalar_lea.sflag [#allocation4], %s1700_s27 }
 0x228   : > { %p1966_p1 = pneg %p1965_p9 }
 0x22a   : > { %2108 = dma.done.wait (%p1966_p1), %s1701_s28, 512  }
 0x22b   : > { %2110 = vsyncadd (%p1966_p1), %s1701_s28, 4294966784  ;;  %s23_s26 = sadd.s32 1, %s2133_s26   ;;  %s2885_s21 = smov %s2117_s22 }
 0x22c   : > { %p20_p2 = scmp.ge.s32.totalorder %s23_s26, 4   ;;  %s2886_s22 = smov %s2121_s23 }
 0x22d   : > { %s2887_s23 = smov %s2229_s11  ;;  %s2888_s24 = smov %s2129_s25 }
 0x22e   : > { %s2889_s25 = smov %s2891_s29  ;;  %22 = sbr.rel (!%p20_p2) target bundleno = 6 (0x6), region = 122 }
 0x233   :  { %1727 = vsyncpa [#allocation3], 1 }
 0x234   :  { %1729 = vsyncpa [#allocation3 + $0x1], 1 }
 0x235   :  { %1730 = vsyncpa [#allocation4], 1 }
 0x236   :  { %1732 = vsyncpa [#allocation4 + $0x1], 1 }

</bundles_post_ra>
